<compile_context>
chip_gen: v6e
topology: v6e:2x2x1
jax: 0.10.0
libtpu: 0.0.40
codegen_flags: <defaults>
</compile_context>

<pallas_src>
import functools

import jax
import jax.numpy as jnp
from jax.experimental import pallas as pl
from jax.experimental.pallas import tpu as pltpu


def _round_up(x, m):
    return ((x + m - 1) // m) * m


def _make_critic_kernel(num_linear_layers):
    """Fused transposed-MLP kernel.

    Ref order: (obs_t, W1, b1, ..., Wk, bk, out).
      obs_t block : (obs_dim, TILE_N)        f32
      W_i         : (out_i_pad, in_i_pad)    f32  (PyTorch (out, in) layout)
      b_i         : (out_i_pad, 1)           f32
      out block   : (1, TILE_N)              f32  (lane-dense)
    Hidden layers use tanh; output layer is identity, matching
    MLP(..., output_activation=nn.Identity).
    """

    def kernel(*refs):
        obs_ref = refs[0]
        out_ref = refs[-1]
        param_refs = refs[1:-1]

        x = obs_ref[...]                               # (obs_dim, TILE_N)
        for i in range(num_linear_layers):
            w = param_refs[2 * i][...]                 # (out, in)
            b = param_refs[2 * i + 1][...]             # (out, 1)
            x = jnp.dot(w, x,
                        preferred_element_type=jnp.float32,
                        precision=jax.lax.Precision.HIGHEST) + b
            if i < num_linear_layers - 1:              # hidden layers only
                x = jnp.tanh(x)                        # EUP slot (off DMA path)
        out_ref[...] = x.astype(out_ref.dtype)         # (1, TILE_N) lane-dense

    return kernel


def init_critic_params(key, obs_dim, hidden_sizes):
    """Deterministic init (critic_init stand-in) in PyTorch layout:
    W_i is (out, in), b_i is (out,)."""
    sizes = [obs_dim] + list(hidden_sizes) + [1]
    params = []
    for i in range(len(sizes) - 1):
        key, wk = jax.random.split(key)
        fan_in, fan_out = sizes[i], sizes[i + 1]
        w = jax.random.normal(wk, (fan_out, fan_in), jnp.float32) / jnp.sqrt(fan_in)
        b = jnp.zeros((fan_out,), jnp.float32)
        params.append((w, b))
    return params


def pad_params_for_kernel(params, pad_to=128):
    """Zero-pad hidden feature dims to multiples of `pad_to`.

    The first layer's input dim (obs_dim) and the last layer's output dim (1)
    are left unpadded. Padded weight rows/cols and bias entries are zero, so
    the padded network computes exactly the same values.
    Returns a flat [W1, b1, W2, b2, ...] list with b_i reshaped to (out, 1).
    """
    n_layers = len(params)
    flat = []
    prev_out_pad = None
    for i, (w, b) in enumerate(params):
        out_dim, in_dim = w.shape
        in_pad = in_dim if i == 0 else prev_out_pad
        out_pad = out_dim if i == n_layers - 1 else _round_up(out_dim, pad_to)
        wp = jnp.zeros((out_pad, in_pad), w.dtype).at[:out_dim, :in_dim].set(w)
        bp = jnp.zeros((out_pad, 1), b.dtype).at[:out_dim, 0].set(b)
        flat += [wp, bp]
        prev_out_pad = out_pad
    return flat


@functools.partial(jax.jit, static_argnames=("tile_n",))
def critic_forward(obs, *flat_params, tile_n=1024):
    """Pallas-backed Critic.forward: obs (n, obs_dim) -> value (n,)."""
    n, obs_dim = obs.shape
    num_linear = len(flat_params) // 2

    # Batch tile: multiple of 128 (lane width), capped by the padded batch.
    tn = min(tile_n, _round_up(max(n, 1), 128))
    n_pad = pl.cdiv(n, tn) * tn

    # Layout plumbing: zero-pad the batch and put it on the lane axis.
    obs_t = jnp.pad(obs.astype(jnp.float32), ((0, n_pad - n), (0, 0))).T

    kernel = _make_critic_kernel(num_linear)

    in_specs = [pl.BlockSpec((obs_dim, tn), lambda i: (0, i))]
    for p in flat_params:
        # Full-array blocks with constant index_map -> stay resident in VMEM.
        in_specs.append(pl.BlockSpec(p.shape, lambda i: (0, 0)))

    out = pl.pallas_call(
        kernel,
        out_shape=jax.ShapeDtypeStruct((1, n_pad), jnp.float32),
        grid=(n_pad // tn,),
        in_specs=in_specs,
        out_specs=pl.BlockSpec((1, tn), lambda i: (0, i)),
        compiler_params=pltpu.CompilerParams(
            dimension_semantics=("parallel",),   # shard batch across TCs (v7x)
        ),
    )(obs_t, *flat_params)

    # (1, n_pad) -> (n,): slice off batch padding; the squeeze is a free
    # reshape of a lane-dense row (no (n,1)->(n,) masked-store copy).
    return out[0, :n]


def critic_reference(obs, params):
    """Plain-JAX reference (PyTorch semantics) for correctness check."""
    x = obs
    for i, (w, b) in enumerate(params):
        x = jnp.dot(x, w.T, precision=jax.lax.Precision.HIGHEST) + b
        if i < len(params) - 1:
            x = jnp.tanh(x)
    return jnp.squeeze(x, axis=-1)


if __name__ == "__main__":
    key = jax.random.PRNGKey(0)

    # Small shapes consistent with the module: obs (n, obs_dim).
    n, obs_dim = 8, 32
    hidden_sizes = (32, 32)

    key, obs_key, param_key = jax.random.split(key, 3)
    obs = jax.random.normal(obs_key, (n, obs_dim), jnp.float32)
    params = init_critic_params(param_key, obs_dim, hidden_sizes)
    flat_params = pad_params_for_kernel(params)

    v = critic_forward(obs, *flat_params)
    v = jax.block_until_ready(v)
    v_ref = critic_reference(obs, params)
    assert v.shape == (n,), v.shape
    assert jnp.allclose(v, v_ref, atol=1e-5, rtol=1e-5), (v, v_ref)

    # Second check: batch not a multiple of the tile -> grid > 1 + padding.
    key, obs_key2 = jax.random.split(key)
    obs2 = jax.random.normal(obs_key2, (300, obs_dim), jnp.float32)
    v2 = jax.block_until_ready(critic_forward(obs2, *flat_params, tile_n=128))
    v2_ref = critic_reference(obs2, params)
    assert v2.shape == (300,), v2.shape
    assert jnp.allclose(v2, v2_ref, atol=1e-5, rtol=1e-5)

    print("KERNEL_OK")
</pallas_src>

<mosaic_0001>
module attributes {stable_mosaic.version = 11 : i64} {
  func.func @kernel(%arg0: i32, %arg1: memref<32x128xf32, #tpu.memory_space<vmem>>, %arg2: memref<128x32xf32, #tpu.memory_space<vmem>>, %arg3: memref<128x1xf32, #tpu.memory_space<vmem>>, %arg4: memref<128x128xf32, #tpu.memory_space<vmem>>, %arg5: memref<128x1xf32, #tpu.memory_space<vmem>>, %arg6: memref<1x128xf32, #tpu.memory_space<vmem>>, %arg7: memref<1x1xf32, #tpu.memory_space<vmem>>, %arg8: memref<1x128xf32, #tpu.memory_space<vmem>>) attributes {dimension_semantics = [#tpu.dimension_semantics<parallel>], iteration_bounds = array<i64: 1>, scalar_prefetch = 0 : i64, scratch_operands = 0 : i64, tpu.core_type = #tpu.core_type<tc>, window_params = [{transform_indices = @transform_0, window_bounds = array<i64: 32, 128>}, {pipeline_mode = #tpu.pipeline_mode<synchronous>, transform_indices = @transform_1, window_bounds = array<i64: 128, 32>}, {pipeline_mode = #tpu.pipeline_mode<synchronous>, transform_indices = @transform_2, window_bounds = array<i64: 128, 1>}, {pipeline_mode = #tpu.pipeline_mode<synchronous>, transform_indices = @transform_3, window_bounds = array<i64: 128, 128>}, {pipeline_mode = #tpu.pipeline_mode<synchronous>, transform_indices = @transform_4, window_bounds = array<i64: 128, 1>}, {pipeline_mode = #tpu.pipeline_mode<synchronous>, transform_indices = @transform_5, window_bounds = array<i64: 1, 128>}, {pipeline_mode = #tpu.pipeline_mode<synchronous>, transform_indices = @transform_6, window_bounds = array<i64: 1, 1>}, {transform_indices = @transform_7, window_bounds = array<i64: 1, 128>}]} {
    %c0 = arith.constant 0 : index
    %c0_0 = arith.constant 0 : index
    %0 = vector.load %arg1[%c0, %c0_0] : memref<32x128xf32, #tpu.memory_space<vmem>>, vector<32x128xf32>
    %c0_1 = arith.constant 0 : index
    %c0_2 = arith.constant 0 : index
    %1 = vector.load %arg2[%c0_1, %c0_2] : memref<128x32xf32, #tpu.memory_space<vmem>>, vector<128x32xf32>
    %c0_3 = arith.constant 0 : index
    %c0_4 = arith.constant 0 : index
    %2 = vector.load %arg3[%c0_3, %c0_4] : memref<128x1xf32, #tpu.memory_space<vmem>>, vector<128x1xf32>
    %cst = arith.constant dense<0.000000e+00> : vector<128x128xf32>
    %3 = tpu.matmul %1, %0, %cst {dimension_numbers = #tpu.dot_dimension_numbers<[1], [0], [0], [1], [0, 0, 1, 1], [], []>, precision = #tpu.contract_precision<fp32>} : vector<128x32xf32>, vector<32x128xf32>, vector<128x128xf32> -> vector<128x128xf32>
    %4 = vector.broadcast %2 : vector<128x1xf32> to vector<128x128xf32>
    %5 = arith.addf %3, %4 : vector<128x128xf32>
    %6 = math.tanh %5 : vector<128x128xf32>
    %c0_5 = arith.constant 0 : index
    %c0_6 = arith.constant 0 : index
    %7 = vector.load %arg4[%c0_5, %c0_6] : memref<128x128xf32, #tpu.memory_space<vmem>>, vector<128x128xf32>
    %c0_7 = arith.constant 0 : index
    %c0_8 = arith.constant 0 : index
    %8 = vector.load %arg5[%c0_7, %c0_8] : memref<128x1xf32, #tpu.memory_space<vmem>>, vector<128x1xf32>
    %cst_9 = arith.constant dense<0.000000e+00> : vector<128x128xf32>
    %9 = tpu.matmul %7, %6, %cst_9 {dimension_numbers = #tpu.dot_dimension_numbers<[1], [0], [0], [1], [0, 0, 1, 1], [], []>, precision = #tpu.contract_precision<fp32>} : vector<128x128xf32>, vector<128x128xf32>, vector<128x128xf32> -> vector<128x128xf32>
    %10 = vector.broadcast %8 : vector<128x1xf32> to vector<128x128xf32>
    %11 = arith.addf %9, %10 : vector<128x128xf32>
    %12 = math.tanh %11 : vector<128x128xf32>
    %c0_10 = arith.constant 0 : index
    %c0_11 = arith.constant 0 : index
    %13 = vector.load %arg6[%c0_10, %c0_11] : memref<1x128xf32, #tpu.memory_space<vmem>>, vector<1x128xf32>
    %c0_12 = arith.constant 0 : index
    %c0_13 = arith.constant 0 : index
    %14 = vector.load %arg7[%c0_12, %c0_13] : memref<1x1xf32, #tpu.memory_space<vmem>>, vector<1x1xf32>
    %cst_14 = arith.constant dense<0.000000e+00> : vector<1x128xf32>
    %15 = tpu.matmul %13, %12, %cst_14 {dimension_numbers = #tpu.dot_dimension_numbers<[1], [0], [0], [1], [0, 0, 1, 1], [], []>, precision = #tpu.contract_precision<fp32>} : vector<1x128xf32>, vector<128x128xf32>, vector<1x128xf32> -> vector<1x128xf32>
    %16 = vector.broadcast %14 : vector<1x1xf32> to vector<1x128xf32>
    %17 = arith.addf %15, %16 : vector<1x128xf32>
    %c0_15 = arith.constant 0 : index
    %c0_16 = arith.constant 0 : index
    %18 = vector.load %arg8[%c0_15, %c0_16] : memref<1x128xf32, #tpu.memory_space<vmem>>, vector<1x128xf32>
    tpu.vector_store %arg8[%c0_15, %c0_16], %17 {strides = array<i32>} : memref<1x128xf32, #tpu.memory_space<vmem>>, vector<1x128xf32>,
    return
  }
  func.func @transform_0(%arg0: i32) -> (i32, i32) {
    %c0_i32 = arith.constant 0 : i32
    %c0_i32_0 = arith.constant 0 : i32
    return %c0_i32, %arg0 : i32, i32
  }
  func.func @transform_1(%arg0: i32) -> (i32, i32) {
    %c0_i32 = arith.constant 0 : i32
    %c0_i32_0 = arith.constant 0 : i32
    %c0_i32_1 = arith.constant 0 : i32
    return %c0_i32, %c0_i32_0 : i32, i32
  }
  func.func @transform_2(%arg0: i32) -> (i32, i32) {
    %c0_i32 = arith.constant 0 : i32
    %c0_i32_0 = arith.constant 0 : i32
    %c0_i32_1 = arith.constant 0 : i32
    return %c0_i32, %c0_i32_0 : i32, i32
  }
  func.func @transform_3(%arg0: i32) -> (i32, i32) {
    %c0_i32 = arith.constant 0 : i32
    %c0_i32_0 = arith.constant 0 : i32
    %c0_i32_1 = arith.constant 0 : i32
    return %c0_i32, %c0_i32_0 : i32, i32
  }
  func.func @transform_4(%arg0: i32) -> (i32, i32) {
    %c0_i32 = arith.constant 0 : i32
    %c0_i32_0 = arith.constant 0 : i32
    %c0_i32_1 = arith.constant 0 : i32
    return %c0_i32, %c0_i32_0 : i32, i32
  }
  func.func @transform_5(%arg0: i32) -> (i32, i32) {
    %c0_i32 = arith.constant 0 : i32
    %c0_i32_0 = arith.constant 0 : i32
    %c0_i32_1 = arith.constant 0 : i32
    return %c0_i32, %c0_i32_0 : i32, i32
  }
  func.func @transform_6(%arg0: i32) -> (i32, i32) {
    %c0_i32 = arith.constant 0 : i32
    %c0_i32_0 = arith.constant 0 : i32
    %c0_i32_1 = arith.constant 0 : i32
    return %c0_i32, %c0_i32_0 : i32, i32
  }
  func.func @transform_7(%arg0: i32) -> (i32, i32) {
    %c0_i32 = arith.constant 0 : i32
    %c0_i32_0 = arith.constant 0 : i32
    return %c0_i32, %arg0 : i32, i32
  }
}

</mosaic_0001>

<bundles_post_ra>
// kernel: critic_forward.1
= control target key start
LH: loop header
LB: loop body
LE: loop exit
PB: predicated region body
PF: predicated region fallthrough
CT: control target
= control target key end

     0   :  { %vm144_vm0 = vcmask 261120   ;;  %v4631_v3 = vmov 0   ;;  %vm4633_vm1 = vmmov 0   ;;  %s6404_s0 = inlined_call_operand.vmem [shape: f32[32,128], index: 0, kind: input, shape index: {}]   ;;  %s6405_s1 = inlined_call_operand.vmem [shape: f32[128,32], index: 1, kind: input, shape index: {}]   ;;  %s6406_s6 = inlined_call_operand.<no memory space> [shape: f32[1,1], index: 6, kind: input, shape index: {}]   ;;  %s6407_s2 = inlined_call_operand.vmem [shape: f32[128,1], index: 2, kind: input, shape index: {}]   ;;  %s6408_s4 = inlined_call_operand.vmem [shape: f32[128,1], index: 4, kind: input, shape index: {}]   ;;  %s6409_s3 = inlined_call_operand.vmem [shape: f32[128,128], index: 3, kind: input, shape index: {}]   ;;  %s6410_s5 = inlined_call_operand.vmem [shape: f32[1,128], index: 5, kind: input, shape index: {}]   ;;  %s6411_s7 = inlined_call_operand.vmem [shape: f32[1,128], index: 7, kind: output, shape index: {}]  }
   0x1   :  { %v31_v0 = vld [vmem:[%s6404_s0 + $0x18] sm:$0xff]  ;;  %v30_v1 = vld [vmem:[%s6404_s0 + $0x10] sm:$0xff]  ;;  %v29_v2 = vld [vmem:[%s6404_s0 + $0x8] sm:$0xff]  ;;  %4566 = vset.pattern.permute.xlu1 %v4631_v3  ;;  %4565 = vset.pattern.permute.xlu0 %v4631_v3  ;;  %v12_v4 = vstv %s6406_s6 }
   0x2   :  { %v4686_v5 = vand.u32 4294901760, %v31_v0  ;;  %v4688_v6 = vand.u32 4294901760, %v30_v1  ;;  %v4690_v7 = vand.u32 4294901760, %v29_v2  ;;  %v28_v8 = vld [vmem:[%s6404_s0] sm:$0xff]  ;;  %v33_v10 = vld [vmem:[%s6405_s1 + $0x8] sm:$0xff]  ;;  %v34_v14 = vld [vmem:[%s6405_s1 + $0x10] sm:$0xff] }
   0x3   :  { %v32_v9 = vld [vmem:[%s6405_s1] sm:$0xff]  ;;  %13 = vst [vmem:[#allocation2] sm:$0x1] %v12_v4  ;;  %v4701_v11 = vand.u32 4294901760, %v28_v8  ;;  %v149_v13 = vsel %vm144_vm0, %v33_v10, 0  ;;  %v35_v15 = vld [vmem:[%s6405_s1 + $0x18] sm:$0xff] }
   0x4   :  { %v146_v12 = vsel %vm144_vm0, %v32_v9, 0  ;;  %3824 = vmatprep.subr.mxu0 %v4686_v5  ;;  %v4713_v16 = vsub.f32 %v31_v0, %v4686_v5  ;;  %v4717_v18 = vand.u32 4294901760, %v149_v13  ;;  %v4720_v19 = vsub.f32 %v30_v1, %v4688_v6  ;;  %v63_v36 = vld [vmem:[%s6407_s2 + $0x78] sm:$0xff]  ;;  %v61_v37 = vld [vmem:[%s6407_s2 + $0x68] sm:$0xff]  ;;  %v36_v42 = vld [vmem:[%s6405_s1 + $0x20] sm:$0xff] }
   0x5   :  { %v4715_v17 = vand.u32 4294901760, %v146_v12  ;;  %3825 = vmatpush3.msra.mxu0 %v4686_v5  ;;  %v4724_v20 = vsub.f32 %v29_v2, %v4690_v7  ;;  %v152_v21 = vsel %vm144_vm0, %v34_v14, 0  ;;  %v155_v22 = vsel %vm144_vm0, %v35_v15, 0  ;;  %v37_v43 = vld [vmem:[%s6405_s1 + $0x28] sm:$0xff]  ;;  %v38_v48 = vld [vmem:[%s6405_s1 + $0x30] sm:$0xff]  ;;  %v39_v49 = vld [vmem:[%s6405_s1 + $0x38] sm:$0xff]  ;;  %141 = vperm.xlu0 %4565, %v63_v36  }
   0x6   :  { %v4729_v23 = vsub.f32 %v28_v8, %v4701_v11  ;;  %3826 = vmatprep.subr.mxu0 %v4688_v6  ;;  %v4733_v24 = vand.u32 4294901760, %v4713_v16  ;;  %v4739_v26 = vsub.f32 %v149_v13, %v4717_v18  ;;  %v4742_v27 = vand.u32 4294901760, %v4720_v19  ;;  %v40_v54 = vld [vmem:[%s6405_s1 + $0x40] sm:$0xff]  ;;  %v41_v55 = vld [vmem:[%s6405_s1 + $0x48] sm:$0xff]  ;;  %131 = vperm.xlu1 %4566, %v61_v37   ;;  %v42_v4 = vld [vmem:[%s6405_s1 + $0x50] sm:$0xff] }
   0x7   :  { %v4736_v25 = vsub.f32 %v146_v12, %v4715_v17  ;;  %3864 = vmatprep.mubr.f32.mxu1 %v4715_v17  ;;  %3827 = vmatpush3.msra.mxu0 %v4688_v6  ;;  %v4747_v28 = vand.u32 4294901760, %v4724_v20  ;;  %v4749_v29 = vand.u32 4294901760, %v152_v21  ;;  %v4751_v30 = vand.u32 4294901760, %v155_v22  ;;  %v43_v8 = vld [vmem:[%s6405_s1 + $0x58] sm:$0xff] }
   0x8   :  { %v4754_v31 = vand.u32 4294901760, %v4729_v23  ;;  %3828 = vmatprep.subr.mxu0 %v4690_v7  ;;  %v450_v32 = vsub.f32 %v4713_v16, %v4733_v24  ;;  %v274_v34 = vand.u32 4294901760, %v4739_v26  ;;  %v457_v35 = vsub.f32 %v4720_v19, %v4742_v27 }
   0x9   :  { %v264_v33 = vand.u32 4294901760, %v4736_v25  ;;  %3829 = vmatpush3.msra.mxu0 %v4690_v7  ;;  %v464_v38 = vsub.f32 %v4724_v20, %v4747_v28  ;;  %v4773_v39 = vsub.f32 %v152_v21, %v4749_v29  ;;  %v4776_v40 = vsub.f32 %v155_v22, %v4751_v30 }
   0xa   :  { %v471_v41 = vsub.f32 %v4729_v23, %v4754_v31  ;;  %3830 = vmatprep.subr.mxu0 %v4701_v11  ;;  %v451_v44 = vand.u32 4294901760, %v450_v32  ;;  %v275_v46 = vsub.f32 %v4739_v26, %v274_v34  ;;  %v458_v47 = vand.u32 4294901760, %v457_v35 }
   0xb   :  { %v265_v45 = vsub.f32 %v4736_v25, %v264_v33  ;;  %3831 = vmatpush3.msra.mxu0 %v4701_v11  ;;  %v465_v50 = vand.u32 4294901760, %v464_v38  ;;  %v284_v51 = vand.u32 4294901760, %v4773_v39  ;;  %v294_v52 = vand.u32 4294901760, %v4776_v40 }
   0xc   :  { %v472_v53 = vand.u32 4294901760, %v471_v41  ;;  %3856 = vmatprep.subr.mxu1 %v451_v44  ;;  %v276_v57 = vand.u32 4294901760, %v275_v46  ;;  %3888 = vmatprep.subr.mxu0 %v4713_v16  ;;  %v158_v58 = vsel %vm144_vm0, %v36_v42, 0  ;;  %v161_v59 = vsel %vm144_vm0, %v37_v43, 0 }
   0xd   :  { %v266_v56 = vand.u32 4294901760, %v265_v45  ;;  %3857 = vmatpush3.msra.mxu1 %v451_v44  ;;  %v285_v60 = vsub.f32 %v4773_v39, %v284_v51  ;;  %v295_v61 = vsub.f32 %v4776_v40, %v294_v52  ;;  %v4817_v62 = vand.u32 4294901760, %v158_v58 }
   0xe   :  { %v4819_v63 = vand.u32 4294901760, %v161_v59  ;;  %3858 = vmatprep.subr.mxu1 %v458_v47  ;;  %v164_v0 = vsel %vm144_vm0, %v38_v48, 0  ;;  %v167_v1 = vsel %vm144_vm0, %v39_v49, 0  ;;  %v170_v2 = vsel %vm144_vm0, %v40_v54, 0  ;;  %v45_v54 = vld [vmem:[%s6405_s1 + $0x68] sm:$0xff] }
   0xf   :  { %3832 = vmatprep.mubr.f32.mxu0 %v266_v56  ;;  %v173_v3 = vsel %vm144_vm0, %v41_v55, 0  ;;  %3859 = vmatpush3.msra.mxu1 %v458_v47  ;;  %v286_v9 = vand.u32 4294901760, %v285_v60  ;;  %v296_v10 = vand.u32 4294901760, %v295_v61  ;;  %v4832_v12 = vsub.f32 %v158_v58, %v4817_v62 }
  0x10   :  { %3833 = vmatmul.mubr.f32.vlgmr.msra.gmra.mxu0 %v276_v57  ;;  %v4835_v13 = vsub.f32 %v161_v59, %v4819_v63  ;;  %3860 = vmatprep.subr.mxu1 %v465_v50  ;;  %v4838_v14 = vand.u32 4294901760, %v164_v0  ;;  %v4840_v15 = vand.u32 4294901760, %v167_v1  ;;  %v4842_v21 = vand.u32 4294901760, %v170_v2 }
  0x11   :  { %3889 = vmatpush3.msra.mxu0 %v4713_v16  ;;  %v4844_v22 = vand.u32 4294901760, %v173_v3  ;;  %3835 = vmatprep.mubr.f32.mxu0 %v286_v9  ;;  %v304_v32 = vand.u32 4294901760, %v4832_v12  ;;  %v176_v36 = vsel %vm144_vm0, %v42_v4, 0  ;;  %v179_v37 = vsel %vm144_vm0, %v43_v8, 0 }
  0x12   :  { %3861 = vmatpush3.msra.mxu1 %v465_v50  ;;  %v314_v35 = vand.u32 4294901760, %v4835_v13  ;;  %v4851_v16 = vsub.f32 %v164_v0, %v4838_v14  ;;  %v4854_v38 = vsub.f32 %v167_v1, %v4840_v15  ;;  %3890 = vmatprep.subr.mxu0 %v4720_v19  ;;  %v4858_v41 = vsub.f32 %v170_v2, %v4842_v21 }
  0x13   :  { %3862 = vmatprep.subr.mxu1 %v472_v53  ;;  %v4860_v42 = vand.u32 4294901760, %v176_v36  ;;  %v305_v43 = vsub.f32 %v4832_v12, %v304_v32  ;;  %v4869_v45 = vsub.f32 %v173_v3, %v4844_v22  ;;  %v4871_v46 = vand.u32 4294901760, %v179_v37  ;;  %3891 = vmatpush3.msra.mxu0 %v4720_v19  ;;  %v46_v3 = vld [vmem:[%s6405_s1 + $0x70] sm:$0xff]  ;;  %v47_v19 = vld [vmem:[%s6405_s1 + $0x78] sm:$0xff] }
  0x14   :  { %3836 = vmatmul.mubr.f32.gmra.mxu0 %v296_v10  ;;  %3863 = vmatpush3.msra.mxu1 %v472_v53  ;;  %v315_v44 = vsub.f32 %v4835_v13, %v314_v35  ;;  %v324_v47 = vand.u32 4294901760, %v4851_v16  ;;  %v334_v48 = vand.u32 4294901760, %v4854_v38  ;;  %v344_v49 = vand.u32 4294901760, %v4858_v41  ;;  %v44_v53 = vld [vmem:[%s6405_s1 + $0x60] sm:$0xff] }
  0x15   :  { %3865 = vmatmul.mubr.f32.vlgmr.msra.gmra.mxu1 %v4717_v18  ;;  %3920 = vmatprep.subr.mxu1 %v4686_v5  ;;  %v4879_v50 = vsub.f32 %v176_v36, %v4860_v42  ;;  %v306_v55 = vand.u32 4294901760, %v305_v43  ;;  %v354_v57 = vand.u32 4294901760, %v4869_v45  ;;  %v4891_v58 = vsub.f32 %v179_v37, %v4871_v46 }
  0x16   :  { %3921 = vmatpush3.msra.mxu1 %v4686_v5  ;;  %v316_v56 = vand.u32 4294901760, %v315_v44  ;;  %3867 = vmatprep.mubr.f32.mxu1 %v4749_v29  ;;  %v325_v59 = vsub.f32 %v4851_v16, %v324_v47  ;;  %v335_v60 = vsub.f32 %v4854_v38, %v334_v48  ;;  %v345_v61 = vsub.f32 %v4858_v41, %v344_v49 }
  0x17   :  { %3922 = vmatprep.subr.mxu1 %v4688_v6  ;;  %v364_v0 = vand.u32 4294901760, %v4879_v50  ;;  %3838 = vmatprep.mubr.f32.mxu0 %v306_v55  ;;  %v182_v1 = vsel %vm144_vm0, %v44_v53, 0  ;;  %v185_v2 = vsel %vm144_vm0, %v45_v54, 0  ;;  %v355_v9 = vsub.f32 %v4869_v45, %v354_v57 }
  0x18   :  { %3923 = vmatpush3.msra.mxu1 %v4688_v6  ;;  %3839 = vmatmul.mubr.f32.gmra.mxu0 %v316_v56  ;;  %v326_v4 = vand.u32 4294901760, %v325_v59  ;;  %v336_v8 = vand.u32 4294901760, %v335_v60  ;;  %v374_v10 = vand.u32 4294901760, %v4891_v58  ;;  %v346_v36 = vand.u32 4294901760, %v345_v61 }
  0x19   :  { %3868 = vmatmul.mubr.f32.gmra.mxu1 %v4751_v30  ;;  %v365_v37 = vsub.f32 %v4879_v50, %v364_v0  ;;  %3892 = vmatprep.subr.mxu0 %v4724_v20  ;;  %v4924_v43 = vand.u32 4294901760, %v182_v1  ;;  %v4926_v44 = vand.u32 4294901760, %v185_v2  ;;  %v188_v53 = vsel %vm144_vm0, %v46_v3, 0 }
  0x1a   :  { %3870 = vmatprep.mubr.f32.mxu1 %v4817_v62  ;;  %3841 = vmatprep.mubr.f32.mxu0 %v326_v4  ;;  %v191_v54 = vsel %vm144_vm0, %v47_v19, 0  ;;  %v4938_v59 = vand.u32 4294901760, %v188_v53  ;;  %v375_v60 = vsub.f32 %v4891_v58, %v374_v10 }
  0x1b   :  { %3893 = vmatpush3.msra.mxu0 %v4724_v20  ;;  %3924 = vmatprep.subr.mxu1 %v4690_v7  ;;  %v4933_v55 = vsub.f32 %v182_v1, %v4924_v43  ;;  %v4936_v56 = vsub.f32 %v185_v2, %v4926_v44  ;;  %v356_v20 = vand.u32 4294901760, %v355_v9  ;;  %v4945_v61 = vand.u32 4294901760, %v191_v54 }
  0x1c   :  { %3894 = vmatprep.subr.mxu0 %v4729_v23  ;;  %3842 = vmatmul.mubr.f32.gmra.mxu0 %v336_v8  ;;  %v366_v1 = vand.u32 4294901760, %v365_v37  ;;  %v4951_v19 = vsub.f32 %v188_v53, %v4938_v59  ;;  %v376_v37 = vand.u32 4294901760, %v375_v60  ;;  %v59_v60 = vld [vmem:[%s6407_s2 + $0x58] sm:$0xff] }
  0x1d   :  { %3871 = vmatmul.mubr.f32.gmra.mxu1 %v4819_v63  ;;  %3844 = vmatprep.mubr.f32.mxu0 %v346_v36  ;;  %v6412_v2 = vand.u32 4294901760, %v4933_v55  ;;  %v394_v3 = vand.u32 4294901760, %v4936_v56  ;;  %v4955_v4 = vsub.f32 %v191_v54, %v4945_v61  ;;  %v62_v36 = vld [vmem:[%s6407_s2 + $0x70] sm:$0xff]  ;;  %v60_v54 = vld [vmem:[%s6407_s2 + $0x60] sm:$0xff] }
  0x1e   :  { %3873 = vmatprep.mubr.f32.mxu1 %v4838_v14  ;;  %3925 = vmatpush3.msra.mxu1 %v4690_v7  ;;  %v6413_v9 = vand.u32 4294901760, %v4951_v19 }
  0x1f   :  { %3895 = vmatpush3.msra.mxu0 %v4729_v23  ;;  %v385_v8 = vsub.f32 %v4933_v55, %v6412_v2  ;;  %3926 = vmatprep.subr.mxu1 %v4701_v11  ;;  %v395_v23 = vsub.f32 %v4936_v56, %v394_v3  ;;  %v414_v53 = vand.u32 4294901760, %v4955_v4 }
  0x20   :  { %3952 = vmatprep.subr.mxu0 %v4733_v24  ;;  %3845 = vmatmul.mubr.f32.gmra.mxu0 %v356_v20  ;;  %v405_v20 = vsub.f32 %v4951_v19, %v6413_v9  ;;  %v58_v9 = vld [vmem:[%s6407_s2 + $0x50] sm:$0xff] }
  0x21   :  { %3874 = vmatmul.mubr.f32.gmra.mxu1 %v4840_v15  ;;  %3847 = vmatprep.mubr.f32.mxu0 %v366_v1  ;;  %v386_v2 = vand.u32 4294901760, %v385_v8  ;;  %v396_v1 = vand.u32 4294901760, %v395_v23  ;;  %v415_v8 = vsub.f32 %v4955_v4, %v414_v53 }
  0x22   :  { %3876 = vmatprep.mubr.f32.mxu1 %v4842_v21  ;;  %3927 = vmatpush3.msra.mxu1 %v4701_v11 }
  0x23   :  { %136 = vperm.xlu0 %4565, %v62_v36   ;;  %3984 = vmatprep.subr.mxu1 %v4686_v5  ;;  %v406_v36 = vand.u32 4294901760, %v405_v20  ;;  %v416_v23 = vand.u32 4294901760, %v415_v8  ;;  %v53_v20 = vld [vmem:[%s6407_s2 + $0x28] sm:$0xff]  ;;  %v1339_v8 = vld [vmem:[%s6409_s3] sm:$0xff] }
  0x24   :  { %126 = vperm.xlu1 %4566, %v60_v54   ;;  %3848 = vmatmul.mubr.f32.gmra.mxu0 %v376_v37  ;;  %v57_v37 = vld [vmem:[%s6407_s2 + $0x48] sm:$0xff]  ;;  %v56_v54 = vld [vmem:[%s6407_s2 + $0x40] sm:$0xff] }
  0x25   :  { %3877 = vmatmul.mubr.f32.gmra.mxu1 %v4844_v22  ;;  %3850 = vmatprep.mubr.f32.mxu0 %v386_v2  ;;  %v55_v2 = vld [vmem:[%s6407_s2 + $0x38] sm:$0xff] }
  0x26   :  { %3879 = vmatprep.mubr.f32.mxu1 %v4860_v42 }
  0x27   :  { %121 = vperm.xlu0 %4565, %v59_v60   ;;  %v52_v60 = vld [vmem:[%s6407_s2 + $0x20] sm:$0xff] }
  0x28   :  { %116 = vperm.xlu1 %4566, %v58_v9   ;;  %3851 = vmatmul.mubr.f32.gmra.mxu0 %v396_v1  ;;  %v54_v9 = vld [vmem:[%s6407_s2 + $0x30] sm:$0xff] }
  0x29   :  { %3880 = vmatmul.mubr.f32.gmra.mxu1 %v4871_v46  ;;  %3853 = vmatprep.mubr.f32.mxu0 %v406_v36 }
  0x2a   :  { %3882 = vmatprep.mubr.f32.mxu1 %v4924_v43 }
  0x2b   :  { %111 = vperm.xlu0 %4565, %v57_v37  }
  0x2c   :  { %106 = vperm.xlu1 %4566, %v56_v54   ;;  %3854 = vmatmul.mubr.f32.gmra.mxu0 %v416_v23  ;;  %v5182_v23 = vand.u32 4294901760, %v1339_v8 }
  0x2d   :  { %3883 = vmatmul.mubr.f32.gmra.mxu1 %v4926_v44  ;;  %3896 = vmatprep.mubr.f32.mxu0 %v4736_v25  ;;  %v1370_v25 = vld [vmem:[%s6408_s4 + $0x78] sm:$0xff] }
  0x2e   :  { %3885 = vmatprep.mubr.f32.mxu1 %v4938_v59  ;;  %6458 = vst [vmem:[#allocation3_spill] sm:$0xff] %v5182_v23 }
  0x2f   :  { %101 = vperm.xlu0 %4565, %v55_v2  }
  0x30   :  { %96 = vperm.xlu1 %4566, %v54_v9   ;;  %3897 = vmatmul.mubr.f32.vlgmr.msra.gmra.mxu0 %v4739_v26  ;;  %v1368_v26 = vld [vmem:[%s6408_s4 + $0x68] sm:$0xff] }
  0x31   :  { %3886 = vmatmul.mubr.f32.gmra.mxu1 %v4945_v61  ;;  %3899 = vmatprep.mubr.f32.mxu0 %v4773_v39  ;;  %v1364_v39 = vld [vmem:[%s6408_s4 + $0x48] sm:$0xff] }
  0x32   :  { %3928 = vmatprep.mubr.f32.mxu1 %v264_v33  ;;  %3953 = vmatpush3.msra.mxu0 %v4733_v24  ;;  %v49_v24 = vld [vmem:[%s6407_s2 + $0x8] sm:$0xff]  ;;  %v6457_v33 = vand.u32 4294901760, %v4951_v19 }
  0x33   :  { %91 = vperm.xlu0 %4565, %v53_v20   ;;  %3954 = vmatprep.subr.mxu0 %v4742_v27  ;;  %v5185_v20 = vsub.f32 %v1339_v8, %v5182_v23 }
  0x34   :  { %86 = vperm.xlu1 %4566, %v52_v60   ;;  %3900 = vmatmul.mubr.f32.gmra.mxu0 %v4776_v40  ;;  %v1363_v40 = vld [vmem:[%s6408_s4 + $0x40] sm:$0xff] }
  0x35   :  { %3929 = vmatmul.mubr.f32.vlgmr.msra.gmra.mxu1 %v274_v34  ;;  %3902 = vmatprep.mubr.f32.mxu0 %v4832_v12  ;;  %v1365_v34 = vld [vmem:[%s6408_s4 + $0x50] sm:$0xff]  ;;  %v2754_v12 = vld [vmem:[#allocation2] sm:$0x1]  ;;  %6459 = vst [vmem:[#allocation4_spill] sm:$0xff] %v5185_v20 }
  0x36   :  { %3985 = vmatpush3.msra.mxu1 %v4686_v5  ;;  %3931 = vmatprep.mubr.f32.mxu1 %v284_v51  ;;  %v51_v5 = vld [vmem:[%s6407_s2 + $0x18] sm:$0xff] }
  0x37   :  { %3955 = vmatpush3.msra.mxu0 %v4742_v27  ;;  %3986 = vmatprep.subr.mxu1 %v4688_v6  ;;  %v6456_v27 = vand.u32 4294901760, %v4933_v55  ;;  %v1362_v51 = vld [vmem:[%s6408_s4 + $0x38] sm:$0xff] }
  0x38   :  { %3956 = vmatprep.subr.mxu0 %v4747_v28  ;;  %3903 = vmatmul.mubr.f32.gmra.mxu0 %v4835_v13 }
  0x39   :  { %3932 = vmatmul.mubr.f32.gmra.mxu1 %v294_v52  ;;  %3905 = vmatprep.mubr.f32.mxu0 %v4851_v16  ;;  %v1357_v52 = vld [vmem:[%s6408_s4 + $0x10] sm:$0xff] }
  0x3a   :  { %3934 = vmatprep.mubr.f32.mxu1 %v304_v32  ;;  %3987 = vmatpush3.msra.mxu1 %v4688_v6  ;;  %v50_v6 = vld [vmem:[%s6407_s2 + $0x10] sm:$0xff] }
  0x3b   :  { %3957 = vmatpush3.msra.mxu0 %v4747_v28  ;;  %3988 = vmatprep.subr.mxu1 %v4690_v7  ;;  %v1367_v28 = vld [vmem:[%s6408_s4 + $0x60] sm:$0xff] }
  0x3c   :  { %3958 = vmatprep.subr.mxu0 %v4754_v31  ;;  %3906 = vmatmul.mubr.f32.gmra.mxu0 %v4854_v38 }
  0x3d   :  { %3935 = vmatmul.mubr.f32.gmra.mxu1 %v314_v35  ;;  %3908 = vmatprep.mubr.f32.mxu0 %v4858_v41 }
  0x3e   :  { %3937 = vmatprep.mubr.f32.mxu1 %v324_v47  ;;  %3989 = vmatpush3.msra.mxu1 %v4690_v7  ;;  %v48_v7 = vld [vmem:[%s6407_s2] sm:$0xff] }
  0x3f   :  { %3959 = vmatpush3.msra.mxu0 %v4754_v31  ;;  %3990 = vmatprep.subr.mxu1 %v4701_v11  ;;  %v1366_v31 = vld [vmem:[%s6408_s4 + $0x58] sm:$0xff] }
  0x40   :  { %81 = vperm.xlu0 %4565, %v51_v5   ;;  %3909 = vmatmul.mubr.f32.gmra.mxu0 %v4869_v45 }
  0x41   :  { %3938 = vmatmul.mubr.f32.gmra.mxu1 %v334_v48  ;;  %3911 = vmatprep.mubr.f32.mxu0 %v4879_v50 }
  0x42   :  { %3940 = vmatprep.mubr.f32.mxu1 %v344_v49  ;;  %3991 = vmatpush3.msra.mxu1 %v4701_v11  ;;  %v1369_v11 = vld [vmem:[%s6408_s4 + $0x70] sm:$0xff] }
  0x43   :  { %76 = vperm.xlu1 %4566, %v50_v6  }
  0x44   :  { %71 = vperm.xlu0 %4565, %v49_v24   ;;  %3912 = vmatmul.mubr.f32.gmra.mxu0 %v4891_v58 }
  0x45   :  { %3941 = vmatmul.mubr.f32.gmra.mxu1 %v354_v57  ;;  %3914 = vmatprep.mubr.f32.mxu0 %v4933_v55 }
  0x46   :  { %3943 = vmatprep.mubr.f32.mxu1 %v364_v0 }
  0x47   :  { %66 = vperm.xlu1 %4566, %v48_v7  }
  0x48   :  { %1448 = vperm.xlu0 %4565, %v1370_v25   ;;  %3915 = vmatmul.mubr.f32.gmra.mxu0 %v4936_v56  ;;  %v6414_v25 = vand.u32 4294901760, %v5185_v20 }
  0x49   :  { %3944 = vmatmul.mubr.f32.gmra.mxu1 %v374_v10  ;;  %3917 = vmatprep.mubr.f32.mxu0 %v4951_v19 }
  0x4a   :  { %3946 = vmatprep.mubr.f32.mxu1 %v6456_v27 }
  0x4b   :  { %1443 = vperm.xlu1 %4566, %v1369_v11  }
  0x4c   :  { %1438 = vperm.xlu0 %4565, %v1368_v26   ;;  %3918 = vmatmul.mubr.f32.gmra.mxu0 %v4955_v4 }
  0x4d   :  { %3947 = vmatmul.mubr.f32.gmra.mxu1 %v394_v3  ;;  %3960 = vmatprep.mubr.f32.mxu0 %v4715_v17 }
  0x4e   :  { %3949 = vmatprep.mubr.f32.mxu1 %v6457_v33 }
  0x4f   :  { %1433 = vperm.xlu1 %4566, %v1367_v28   ;;  %v1535_v28 = vsub.f32 %v5185_v20, %v6414_v25 }
  0x50   :  { %1428 = vperm.xlu0 %4565, %v1366_v31   ;;  %3961 = vmatmul.mubr.f32.vlgmr.msra.gmra.mxu0 %v4717_v18 }
  0x51   :  { %3950 = vmatmul.mubr.f32.gmra.mxu1 %v414_v53  ;;  %3963 = vmatprep.mubr.f32.mxu0 %v4749_v29 }
  0x52   :  { %3992 = vmatprep.mubr.f32.mxu1 %v4715_v17  ;;  %v1361_v17 = vld [vmem:[%s6408_s4 + $0x30] sm:$0xff] }
  0x53   :  { %1423 = vperm.xlu1 %4566, %v1365_v34  }
  0x54   :  { %1418 = vperm.xlu0 %4565, %v1364_v39   ;;  %3964 = vmatmul.mubr.f32.gmra.mxu0 %v4751_v30 }
  0x55   :  { %3993 = vmatmul.mubr.f32.vlgmr.msra.gmra.mxu1 %v4717_v18  ;;  %3966 = vmatprep.mubr.f32.mxu0 %v4817_v62  ;;  %v1360_v18 = vld [vmem:[%s6408_s4 + $0x28] sm:$0xff] }
  0x56   :  { %3995 = vmatprep.mubr.f32.mxu1 %v4749_v29  ;;  %v1359_v29 = vld [vmem:[%s6408_s4 + $0x20] sm:$0xff] }
  0x57   :  { %1413 = vperm.xlu1 %4566, %v1363_v40  }
  0x58   :  { %1408 = vperm.xlu0 %4565, %v1362_v51   ;;  %3967 = vmatmul.mubr.f32.gmra.mxu0 %v4819_v63  ;;  %v1536_v51 = vand.u32 4294901760, %v1535_v28 }
  0x59   :  { %3996 = vmatmul.mubr.f32.gmra.mxu1 %v4751_v30  ;;  %3969 = vmatprep.mubr.f32.mxu0 %v4838_v14  ;;  %v1358_v30 = vld [vmem:[%s6408_s4 + $0x18] sm:$0xff] }
  0x5a   :  { %3998 = vmatprep.mubr.f32.mxu1 %v4817_v62  ;;  %v1356_v62 = vld [vmem:[%s6408_s4 + $0x8] sm:$0xff] }
  0x5b   :  { %1403 = vperm.xlu1 %4566, %v1361_v17  }
  0x5c   :  { %1398 = vperm.xlu0 %4565, %v1360_v18   ;;  %3970 = vmatmul.mubr.f32.gmra.mxu0 %v4840_v15 }
  0x5d   :  { %3999 = vmatmul.mubr.f32.gmra.mxu1 %v4819_v63  ;;  %3972 = vmatprep.mubr.f32.mxu0 %v4842_v21  ;;  %v1355_v63 = vld [vmem:[%s6408_s4] sm:$0xff] }
  0x5e   :  { %4001 = vmatprep.mubr.f32.mxu1 %v4838_v14 }
  0x5f   :  { %1393 = vperm.xlu1 %4566, %v1359_v29  }
  0x60   :  { %1388 = vperm.xlu0 %4565, %v1358_v30   ;;  %3973 = vmatmul.mubr.f32.gmra.mxu0 %v4844_v22 }
  0x61   :  { %4002 = vmatmul.mubr.f32.gmra.mxu1 %v4840_v15  ;;  %3975 = vmatprep.mubr.f32.mxu0 %v4860_v42 }
  0x62   :  { %4004 = vmatprep.mubr.f32.mxu1 %v4842_v21 }
  0x63   :  { %1383 = vperm.xlu1 %4566, %v1357_v52  }
  0x64   :  { %1378 = vperm.xlu0 %4565, %v1356_v62   ;;  %3976 = vmatmul.mubr.f32.gmra.mxu0 %v4871_v46 }
  0x65   :  { %4005 = vmatmul.mubr.f32.gmra.mxu1 %v4844_v22  ;;  %3978 = vmatprep.mubr.f32.mxu0 %v4924_v43 }
  0x66   :  { %4007 = vmatprep.mubr.f32.mxu1 %v4860_v42 }
  0x67   :  { %1373 = vperm.xlu1 %4566, %v1355_v63  }
  0x68   :  { %2757 = vperm.xlu0 %4565, %v2754_v12   ;;  %3979 = vmatmul.mubr.f32.gmra.mxu0 %v4926_v44 }
  0x69   :  { %4008 = vmatmul.mubr.f32.gmra.mxu1 %v4871_v46  ;;  %3981 = vmatprep.mubr.f32.mxu0 %v4938_v59 }
  0x6a   :  { %4010 = vmatprep.mubr.f32.mxu1 %v4924_v43 }
  0x6c   :  { %3982 = vmatmul.mubr.f32.gmra.mxu0 %v4945_v61 }
  0x6d   :  { %4011 = vmatmul.mubr.f32.gmra.mxu1 %v4926_v44  ;;  %4048 = vmatprep.mubr.f32.mxu0 %v1536_v51 }
  0x6e   :  { %4013 = vmatprep.mubr.f32.mxu1 %v4938_v59 }
  0x71   :  { %4014 = vmatmul.mubr.f32.gmra.mxu1 %v4945_v61 }
  0x72   :  { %4104 = vmatprep.mubr.f32.mxu1 %v5182_v23 }
  0x80   :  { %v5169_v13 = vpop.permute.xlu0 %141 }
  0x81   :  { %v5171_v14 = vpop.permute.xlu1 %131 }
  0x9e   :  { %v5173_v15 = vpop.permute.xlu0 %136 }
  0x9f   :  { %v5175_v21 = vpop.permute.xlu1 %126 }
  0xa2   :  { %v122_v22 = vpop.permute.xlu0 %121 }
  0xa3   :  { %v5177_v32 = vpop.permute.xlu1 %116 }
  0xa6   :  { %v112_v35 = vpop.permute.xlu0 %111 }
  0xa7   :  { %v107_v16 = vpop.permute.xlu1 %106 }
  0xaa   :  { %v102_v38 = vpop.permute.xlu0 %101 }
  0xab   :  { %v97_v41 = vpop.permute.xlu1 %96 }
  0xae   :  { %v92_v42 = vpop.permute.xlu0 %91 }
  0xaf   :  { %v87_v45 = vpop.permute.xlu1 %86 }
  0xbb   :  { %v82_v46 = vpop.permute.xlu0 %81 }
  0xbe   :  { %v77_v47 = vpop.permute.xlu1 %76 }
  0xbf   :  { %v72_v48 = vpop.permute.xlu0 %71 }
  0xc2   :  { %v67_v58 = vpop.permute.xlu1 %66 }
  0xd0   :  { %v3834_v49 = vpop.f32.mrf.mxu0 }
  0xd1   :  { %v279_v57 = vadd.f32 %v3834_v49, %v72_v48 }
  0xd2   :  { %v268_v50 = vpop.f32.mrf.mxu0 }
  0xd3   :  { %v269_v43 = vadd.f32 %v268_v50, %v67_v58 }
  0xd4   :  { %v3837_v0 = vpop.f32.mrf.mxu0 }
  0xd5   :  { %v3866_v10 = vpop.f32.mrf.mxu1  ;;  %v299_v44 = vadd.f32 %v3837_v0, %v82_v46 }
  0xd6   :  { %v288_v55 = vpop.f32.mrf.mxu0  ;;  %v516_v56 = vadd.f32 %v3866_v10, %v279_v57 }
  0xd7   :  { %v509_v59 = vpop.f32.mrf.mxu1  ;;  %v289_v4 = vadd.f32 %v288_v55, %v77_v47 }
  0xd8   :  { %v510_v61 = vadd.f32 %v509_v59, %v269_v43  ;;  %v3840_v3 = vpop.f32.mrf.mxu0 }
  0xd9   :  { %v3869_v19 = vpop.f32.mrf.mxu1  ;;  %v319_v53 = vadd.f32 %v3840_v3, %v92_v42 }
  0xda   :  { %v528_v1 = vadd.f32 %v3869_v19, %v299_v44  ;;  %v308_v36 = vpop.f32.mrf.mxu0 }
  0xdb   :  { %v521_v37 = vpop.f32.mrf.mxu1  ;;  %v309_v60 = vadd.f32 %v308_v36, %v87_v45 }
  0xdc   :  { %v522_v54 = vadd.f32 %v521_v37, %v289_v4  ;;  %v3843_v2 = vpop.f32.mrf.mxu0 }
  0xdd   :  { %v3872_v9 = vpop.f32.mrf.mxu1  ;;  %v339_v5 = vadd.f32 %v3843_v2, %v102_v38 }
  0xde   :  { %v540_v6 = vadd.f32 %v3872_v9, %v319_v53  ;;  %v328_v24 = vpop.f32.mrf.mxu0 }
  0xdf   :  { %v533_v7 = vpop.f32.mrf.mxu1  ;;  %v329_v31 = vadd.f32 %v328_v24, %v97_v41 }
  0xe0   :  { %v534_v11 = vadd.f32 %v533_v7, %v309_v60  ;;  %v3846_v26 = vpop.f32.mrf.mxu0 }
  0xe1   :  { %v3875_v27 = vpop.f32.mrf.mxu1  ;;  %v359_v33 = vadd.f32 %v3846_v26, %v112_v35 }
  0xe2   :  { %v5192_v34 = vadd.f32 %v3875_v27, %v339_v5  ;;  %v348_v39 = vpop.f32.mrf.mxu0 }
  0xe3   :  { %v545_v40 = vpop.f32.mrf.mxu1  ;;  %v349_v30 = vadd.f32 %v348_v39, %v107_v16 }
  0xe4   :  { %v5194_v17 = vadd.f32 %v545_v40, %v329_v31  ;;  %v3849_v18 = vpop.f32.mrf.mxu0 }
  0xe5   :  { %v3878_v29 = vpop.f32.mrf.mxu1  ;;  %v379_v52 = vadd.f32 %v3849_v18, %v122_v22 }
  0xe6   :  { %v5196_v62 = vadd.f32 %v3878_v29, %v359_v33  ;;  %v368_v63 = vpop.f32.mrf.mxu0 }
  0xe7   :  { %v557_v12 = vpop.f32.mrf.mxu1  ;;  %v369_v42 = vadd.f32 %v368_v63, %v5177_v32 }
  0xe8   :  { %v5198_v38 = vadd.f32 %v557_v12, %v349_v30  ;;  %v3852_v41 = vpop.f32.mrf.mxu0 }
  0xe9   :  { %v3881_v35 = vpop.f32.mrf.mxu1  ;;  %v399_v45 = vadd.f32 %v3852_v41, %v5171_v14 }
  0xea   :  { %v5202_v46 = vadd.f32 %v3881_v35, %v379_v52  ;;  %v388_v47 = vpop.f32.mrf.mxu0 }
  0xeb   :  { %v569_v48 = vpop.f32.mrf.mxu1  ;;  %v389_v50 = vadd.f32 %v388_v47, %v5175_v21 }
  0xec   :  { %v5204_v49 = vadd.f32 %v569_v48, %v369_v42  ;;  %v5206_v16 = vpop.f32.mrf.mxu0 }
  0xed   :  { %v3884_v22 = vpop.f32.mrf.mxu1 }
  0xee   :  { %v5209_v57 = vadd.f32 %v3884_v22, %v399_v45  ;;  %v5211_v58 = vpop.f32.mrf.mxu0 }
  0xef   :  { %v581_v0 = vpop.f32.mrf.mxu1 }
  0xf0   :  { %v5213_v10 = vadd.f32 %v581_v0, %v389_v50  ;;  %v3898_v32 = vpop.f32.mrf.mxu0 }
  0xf1   :  { %v5215_v14 = vpop.f32.mrf.mxu1  ;;  %v687_v43 = vadd.f32 %v3898_v32, %v516_v56 }
  0xf2   :  { %v679_v44 = vpop.f32.mrf.mxu0 }
  0xf3   :  { %v5217_v55 = vpop.f32.mrf.mxu1  ;;  %v680_v59 = vadd.f32 %v679_v44, %v510_v61 }
  0xf4   :  { %v3901_v3 = vpop.f32.mrf.mxu0 }
  0xf5   :  { %v3930_v19 = vpop.f32.mrf.mxu1  ;;  %v701_v4 = vadd.f32 %v3901_v3, %v528_v1 }
  0xf6   :  { %v5219_v53 = vadd.f32 %v3930_v19, %v687_v43  ;;  %v693_v21 = vpop.f32.mrf.mxu0 }
  0xf7   :  { %v861_v8 = vpop.f32.mrf.mxu1  ;;  %v694_v36 = vadd.f32 %v693_v21, %v522_v54 }
  0xf8   :  { %6460 = vst [vmem:[#allocation5_spill] sm:$0xff] %v5219_v53  ;;  %v5221_v37 = vadd.f32 %v861_v8, %v680_v59  ;;  %v3904_v2 = vpop.f32.mrf.mxu0 }
  0xf9   :  { %v3933_v9 = vpop.f32.mrf.mxu1  ;;  %v715_v60 = vadd.f32 %v3904_v2, %v540_v6 }
  0xfa   :  { %6461 = vst [vmem:[#allocation6_spill] sm:$0xff] %v5221_v37  ;;  %v5223_v5 = vadd.f32 %v3933_v9, %v701_v4  ;;  %v707_v56 = vpop.f32.mrf.mxu0 }
  0xfb   :  { %v877_v24 = vpop.f32.mrf.mxu1  ;;  %v708_v7 = vadd.f32 %v707_v56, %v534_v11 }
  0xfc   :  { %v5225_v26 = vadd.f32 %v877_v24, %v694_v36  ;;  %v5227_v61 = vpop.f32.mrf.mxu0 }
  0xfd   :  { %v3936_v1 = vpop.f32.mrf.mxu1 }
  0xfe   :  { %v5229_v27 = vadd.f32 %v3936_v1, %v715_v60  ;;  %v5231_v28 = vpop.f32.mrf.mxu0 }
  0xff   :  { %v893_v54 = vpop.f32.mrf.mxu1 }
 0x100   :  { %v5233_v31 = vadd.f32 %v893_v54, %v708_v7  ;;  %v3910_v33 = vpop.f32.mrf.mxu0  ;;  %v419_v54 = vadd.f32 %v5206_v16, %v5169_v13 }
 0x101   :  { %v5235_v39 = vpop.f32.mrf.mxu1 }
 0x102   :  { %v735_v6 = vpop.f32.mrf.mxu0 }
 0x103   :  { %v5237_v40 = vpop.f32.mrf.mxu1 }
 0x104   :  { %v3913_v51 = vpop.f32.mrf.mxu0 }
 0x105   :  { %v3942_v11 = vpop.f32.mrf.mxu1  ;;  %v757_v25 = vadd.f32 %v3913_v51, %v5202_v46  ;;  %v743_v46 = vadd.f32 %v3910_v33, %v5196_v62 }
 0x106   :  { %v749_v18 = vpop.f32.mrf.mxu0 }
 0x107   :  { %v5239_v29 = vpop.f32.mrf.mxu1 }
 0x108   :  { %v3916_v30 = vpop.f32.mrf.mxu0 }
 0x109   :  { %v3945_v52 = vpop.f32.mrf.mxu1 }
 0x10a   :  { %v763_v63 = vpop.f32.mrf.mxu0  ;;  %v950_v37 = vadd.f32 %v3945_v52, %v757_v25 }
 0x10b   :  { %v941_v12 = vpop.f32.mrf.mxu1 }
 0x10c   :  { %v3919_v41 = vpop.f32.mrf.mxu0 }
 0x10d   :  { %v3948_v35 = vpop.f32.mrf.mxu1 }
 0x10e   :  { %v777_v42 = vpop.f32.mrf.mxu0 }
 0x10f   :  { %v957_v45 = vpop.f32.mrf.mxu1 }
 0x110   :  { %v5241_v47 = vpop.f32.mrf.mxu0 }
 0x111   :  { %6462 = vst [vmem:[#allocation7_spill] sm:$0xff] %v5241_v47  ;;  %v3951_v48 = vpop.f32.mrf.mxu1 }
 0x112   :  { %v5243_v22 = vpop.f32.mrf.mxu0 }
 0x113   :  { %6463 = vst [vmem:[#allocation8_spill] sm:$0xff] %v5243_v22  ;;  %v973_v50 = vpop.f32.mrf.mxu1  ;;  %v750_v22 = vadd.f32 %v749_v18, %v5204_v49  ;;  %v736_v18 = vadd.f32 %v735_v6, %v5198_v38 }
 0x114   :  { %v5245_v0 = vpop.f32.mrf.mxu0 }
 0x115   :  { %v5247_v32 = vpop.f32.mrf.mxu1  ;;  %v942_v16 = vadd.f32 %v941_v12, %v750_v22  ;;  %v926_v12 = vadd.f32 %v5239_v29, %v736_v18 }
 0x116   :  { %6464 = vst [vmem:[#allocation9_spill] sm:$0xff] %v5247_v32  ;;  %v5249_v43 = vpop.f32.mrf.mxu0  ;;  %v409_v32 = vadd.f32 %v5211_v58, %v5173_v15  ;;  %v729_v15 = vadd.f32 %v5227_v61, %v5192_v34 }
 0x117   :  { %6465 = vst [vmem:[#allocation10_spill] sm:$0xff] %v5249_v43  ;;  %v5251_v44 = vpop.f32.mrf.mxu1 }
 0x118   :  { %6466 = vst [vmem:[#allocation11_spill] sm:$0xff] %v5251_v44  ;;  %v5253_v59 = vpop.f32.mrf.mxu0  ;;  %v771_v44 = vadd.f32 %v3916_v30, %v5209_v57  ;;  %v594_v13 = vadd.f32 %v5217_v55, %v409_v32 }
 0x119   :  { %v5255_v3 = vpop.f32.mrf.mxu1 }
 0x11a   :  { %6467 = vst [vmem:[#allocation12_spill] sm:$0xff] %v5255_v3  ;;  %v5257_v19 = vpop.f32.mrf.mxu0  ;;  %v764_v3 = vadd.f32 %v763_v63, %v5213_v10  ;;  %v966_v43 = vadd.f32 %v3948_v35, %v771_v44  ;;  %v778_v55 = vadd.f32 %v777_v42, %v594_v13 }
 0x11b   :  { %v5259_v4 = vpop.f32.mrf.mxu1 }
 0x11c   :  { %6468 = vst [vmem:[#allocation13_spill] sm:$0xff] %v5259_v4  ;;  %v3971_v21 = vpop.f32.mrf.mxu0  ;;  %v600_v4 = vadd.f32 %v5215_v14, %v419_v54  ;;  %v958_v25 = vadd.f32 %v957_v45, %v764_v3  ;;  %v934_v14 = vadd.f32 %v3942_v11, %v743_v46 }
 0x11d   :  { %v5261_v8 = vpop.f32.mrf.mxu1 }
 0x11e   :  { %v5263_v36 = vpop.f32.mrf.mxu0  ;;  %v785_v49 = vadd.f32 %v3919_v41, %v600_v4 }
 0x11f   :  { %v5265_v2 = vpop.f32.mrf.mxu1 }
 0x120   :  { %v3974_v9 = vpop.f32.mrf.mxu0  ;;  %v982_v32 = vadd.f32 %v3951_v48, %v785_v49 }
 0x121   :  { %v5267_v60 = vpop.f32.mrf.mxu1  ;;  %v1119_v34 = vadd.f32 %v3974_v9, %v934_v14 }
 0x122   :  { %v1112_v56 = vpop.f32.mrf.mxu0 }
 0x123   :  { %v5269_v24 = vpop.f32.mrf.mxu1  ;;  %v1113_v6 = vadd.f32 %v1112_v56, %v926_v12 }
 0x124   :  { %v3977_v7 = vpop.f32.mrf.mxu0 }
 0x125   :  { %v4006_v1 = vpop.f32.mrf.mxu1  ;;  %v1131_v51 = vadd.f32 %v3977_v7, %v950_v37  ;;  %v722_v37 = vadd.f32 %v5231_v28, %v5194_v17 }
 0x126   :  { %v1124_v23 = vpop.f32.mrf.mxu0  ;;  %v1284_v11 = vadd.f32 %v4006_v1, %v1119_v34 }
 0x127   :  { %v1277_v20 = vpop.f32.mrf.mxu1  ;;  %v1125_v52 = vadd.f32 %v1124_v23, %v942_v16  ;;  %v910_v17 = vadd.f32 %v5237_v40, %v722_v37  ;;  %v1089_v40 = vadd.f32 %v5257_v19, %v5233_v31  ;;  %v6471_v19 = vld [vmem:[#allocation13_spill] sm:$0xff] }
 0x128   :  { %v3980_v47 = vpop.f32.mrf.mxu0  ;;  %v1278_v29 = vadd.f32 %v1277_v20, %v1113_v6 }
 0x129   :  { %v4009_v53 = vpop.f32.mrf.mxu1  ;;  %v1143_v58 = vadd.f32 %v3980_v47, %v966_v43  ;;  %v974_v47 = vadd.f32 %v973_v50, %v778_v55  ;;  %v1101_v44 = vadd.f32 %v5263_v36, %v910_v17  ;;  %v1254_v36 = vadd.f32 %v5265_v2, %v1089_v40  ;;  %v6473_v2 = vld [vmem:[#allocation7_spill] sm:$0xff] }
 0x12a   :  { %v1136_v57 = vpop.f32.mrf.mxu0  ;;  %v1296_v10 = vadd.f32 %v4009_v53, %v1131_v51  ;;  %v918_v53 = vadd.f32 %v5235_v39, %v729_v15  ;;  %v1095_v39 = vadd.f32 %v5253_v59, %v5229_v27  ;;  %v6470_v27 = vld [vmem:[#allocation12_spill] sm:$0xff] }
 0x12b   :  { %v1289_v30 = vpop.f32.mrf.mxu1  ;;  %v1137_v62 = vadd.f32 %v1136_v57, %v958_v25  ;;  %v1266_v4 = vadd.f32 %v5269_v24, %v1101_v44  ;;  %v6475_v15 = vld [vmem:[#allocation8_spill] sm:$0xff]  ;;  %v6476_v25 = vld [vmem:[#allocation9_spill] sm:$0xff] }
 0x12c   :  { %v3983_v63 = vpop.f32.mrf.mxu0  ;;  %v1290_v61 = vadd.f32 %v1289_v30, %v1125_v52  ;;  %v1107_v28 = vadd.f32 %v3971_v21, %v918_v53  ;;  %v1260_v20 = vadd.f32 %v5261_v8, %v1095_v39  ;;  %v1083_v21 = vadd.f32 %v5245_v0, %v5223_v5  ;;  %v6472_v0 = vld [vmem:[#allocation5_spill] sm:$0xff]  ;;  %v6474_v30 = vld [vmem:[#allocation6_spill] sm:$0xff]  ;;  %v1340_v39 = vld [vmem:[%s6409_s3 + $0x8] sm:$0xff] }
 0x12d   :  { %v4012_v35 = vpop.f32.mrf.mxu1  ;;  %v1155_v38 = vadd.f32 %v3983_v63, %v982_v32  ;;  %v1071_v13 = vadd.f32 %v6473_v2, %v6472_v0  ;;  %v1065_v49 = vadd.f32 %v6475_v15, %v6474_v30 }
 0x12e   :  { %v1308_v33 = vadd.f32 %v4012_v35, %v1143_v58  ;;  %v1148_v41 = vpop.f32.mrf.mxu0  ;;  %v1272_v3 = vadd.f32 %v5267_v60, %v1107_v28  ;;  %v6469_v60 = vld [vmem:[#allocation10_spill] sm:$0xff]  ;;  %v1248_v59 = vadd.f32 %v6470_v27, %v1083_v21  ;;  %v6477_v35 = vld [vmem:[#allocation11_spill] sm:$0xff] }
 0x12f   :  { %v1301_v45 = vpop.f32.mrf.mxu1  ;;  %v1149_v48 = vadd.f32 %v1148_v41, %v974_v47  ;;  %v1077_v56 = vadd.f32 %v6469_v60, %v5225_v26  ;;  %v1236_v58 = vadd.f32 %v6476_v25, %v1071_v13  ;;  %v1230_v55 = vadd.f32 %v6477_v35, %v1065_v49 }
 0x130   :  { %4567 = vtanh.f32 %v1308_v33  ;;  %v1302_v23 = vadd.f32 %v1301_v45, %v1137_v62 }
 0x131   :  { %4569 = vtanh.f32 %v1296_v10  ;;  %v4015_v42 = vpop.f32.mrf.mxu1  ;;  %v1242_v8 = vadd.f32 %v6471_v19, %v1077_v56  ;;  %v5408_v56 = vand.u32 4294901760, %v1340_v39 }
 0x132   :  { %4571 = vtanh.f32 %v1302_v23  ;;  %v1320_v22 = vadd.f32 %v4015_v42, %v1155_v38 }
 0x133   :  { %4573 = vtanh.f32 %v1290_v61  ;;  %v1313_v43 = vpop.f32.mrf.mxu1  ;;  %v5441_v30 = vsub.f32 %v1340_v39, %v5408_v56  ;;  %v1344_v39 = vld [vmem:[%s6409_s3 + $0x28] sm:$0xff] }
 0x134   :  { %4575 = vtanh.f32 %v1320_v22  ;;  %v1314_v50 = vadd.f32 %v1313_v43, %v1149_v48 }
 0x135   :  { %4577 = vtanh.f32 %v1284_v11 }
 0x136   :  { %4579 = vtanh.f32 %v1314_v50 }
 0x137   :  { %4581 = vtanh.f32 %v1278_v29 }
 0x138   :  { %4583 = vtanh.f32 %v1272_v3 }
 0x139   :  { %4585 = vtanh.f32 %v1266_v4 }
 0x13a   :  { %4587 = vtanh.f32 %v1260_v20 }
 0x13b   :  { %4589 = vtanh.f32 %v1254_v36 }
 0x13c   :  { %4591 = vtanh.f32 %v1248_v59 }
 0x13d   :  { %v4568_v9 = vpop.eup %4567  ;;  %4593 = vtanh.f32 %v1242_v8  ;;  %v1341_v8 = vld [vmem:[%s6409_s3 + $0x10] sm:$0xff] }
 0x13e   :  { %v4570_v24 = vpop.eup %4569  ;;  %v5304_v7 = vand.u32 4294901760, %v4568_v9  ;;  %4595 = vtanh.f32 %v1236_v58  ;;  %v5443_v15 = vand.u32 4294901760, %v1341_v8 }
 0x13f   :  { %v4572_v31 = vpop.eup %4571  ;;  %v5311_v26 = vand.u32 4294901760, %v4570_v24  ;;  %4597 = vtanh.f32 %v1230_v55  ;;  %v1343_v55 = vld [vmem:[%s6409_s3 + $0x20] sm:$0xff] }
 0x140   :  { %v4574_v1 = vpop.eup %4573  ;;  %v5307_v54 = vand.u32 4294901760, %v4572_v31  ;;  %v5316_v51 = vsub.f32 %v4568_v9, %v5304_v7 }
 0x141   :  { %v4576_v5 = vpop.eup %4575  ;;  %v5321_v14 = vand.u32 4294901760, %v4574_v1  ;;  %v5347_v34 = vsub.f32 %v4570_v24, %v5311_v26 }
 0x142   :  { %v4578_v46 = vpop.eup %4577  ;;  %v5313_v16 = vand.u32 4294901760, %v4576_v5  ;;  %v5330_v63 = vsub.f32 %v4572_v31, %v5307_v54  ;;  %v5344_v12 = vand.u32 4294901760, %v5316_v51 }
 0x143   :  { %v4580_v57 = vpop.eup %4579  ;;  %v5333_v32 = vand.u32 4294901760, %v4578_v46  ;;  %v5362_v23 = vsub.f32 %v4574_v1, %v5321_v14  ;;  %v5376_v17 = vand.u32 4294901760, %v5347_v34 }
 0x144   :  { %v4582_v18 = vpop.eup %4581  ;;  %v5323_v52 = vand.u32 4294901760, %v4580_v57  ;;  %4016 = vmatprep.subr.mxu0 %v5313_v16  ;;  %v5327_v10 = vsub.f32 %v4576_v5, %v5313_v16  ;;  %6478 = vst [vmem:[#allocation10_spill] sm:$0xff] %v5344_v12  ;;  %v5359_v38 = vand.u32 4294901760, %v5330_v63  ;;  %v1710_v22 = vsub.f32 %v5316_v51, %v5344_v12 }
 0x145   :  { %4017 = vmatpush3.msra.mxu0 %v5313_v16  ;;  %v4584_v62 = vpop.eup %4583  ;;  %v5349_v61 = vand.u32 4294901760, %v4582_v18  ;;  %v5368_v6 = vsub.f32 %v4578_v46, %v5333_v32  ;;  %6480 = vst [vmem:[#allocation13_spill] sm:$0xff] %v5376_v17  ;;  %v5385_v44 = vand.u32 4294901760, %v5362_v23  ;;  %v1724_v21 = vsub.f32 %v5347_v34, %v5376_v17  ;;  %v1342_v46 = vld [vmem:[%s6409_s3 + $0x18] sm:$0xff] }
 0x146   :  { %4018 = vmatprep.subr.mxu0 %v5323_v52  ;;  %v5338_v33 = vand.u32 4294901760, %v5327_v10  ;;  %v5341_v37 = vsub.f32 %v4580_v57, %v5323_v52  ;;  %v4586_v41 = vpop.eup %4585  ;;  %6479 = vst [vmem:[#allocation12_spill] sm:$0xff] %v5359_v38  ;;  %v5364_v53 = vand.u32 4294901760, %v4584_v62  ;;  %v1717_v50 = vsub.f32 %v5330_v63, %v5359_v38  ;;  %v1348_v38 = vld [vmem:[%s6409_s3 + $0x48] sm:$0xff] }
 0x147   :  { %4019 = vmatpush3.msra.mxu0 %v5323_v52  ;;  %v4588_v11 = vpop.eup %4587  ;;  %v5378_v28 = vand.u32 4294901760, %v4586_v41  ;;  %6481 = vst [vmem:[#allocation5_spill] sm:$0xff] %v5385_v44  ;;  %v5388_v3 = vsub.f32 %v4582_v18, %v5349_v61  ;;  %v1711_v20 = vand.u32 4294901760, %v1710_v22  ;;  %v5400_v36 = vand.u32 4294901760, %v5368_v6 }
 0x148   :  { %4020 = vmatprep.subr.mxu0 %v5304_v7  ;;  %v1696_v45 = vsub.f32 %v5327_v10, %v5338_v33  ;;  %v5356_v47 = vand.u32 4294901760, %v5341_v37  ;;  %v4590_v29 = vpop.eup %4589  ;;  %v5393_v4 = vand.u32 4294901760, %v4588_v11  ;;  %v5403_v9 = vsub.f32 %v4584_v62, %v5364_v53 }
 0x149   :  { %4021 = vmatpush3.msra.mxu0 %v5304_v7  ;;  %v4592_v40 = vpop.eup %4591  ;;  %6482 = vst [vmem:[#allocation7_spill] sm:$0xff] %v5400_v36  ;;  %v5405_v60 = vand.u32 4294901760, %v4590_v29  ;;  %v1718_v59 = vand.u32 4294901760, %v1717_v50  ;;  %v1731_v24 = vsub.f32 %v5362_v23, %v5385_v44  ;;  %v5414_v31 = vand.u32 4294901760, %v5388_v3 }
 0x14a   :  { %4022 = vmatprep.subr.mxu0 %v5307_v54  ;;  %v1697_v42 = vand.u32 4294901760, %v1696_v45  ;;  %v1703_v48 = vsub.f32 %v5341_v37, %v5356_v47  ;;  %v4594_v27 = vpop.eup %4593  ;;  %v5417_v19 = vsub.f32 %v4586_v41, %v5378_v28  ;;  %v5422_v1 = vand.u32 4294901760, %v4592_v40 }
 0x14b   :  { %4023 = vmatpush3.msra.mxu0 %v5307_v54  ;;  %6483 = vst [vmem:[#allocation6_spill] sm:$0xff] %v5414_v31  ;;  %v1725_v5 = vand.u32 4294901760, %v1724_v21  ;;  %v1738_v0 = vsub.f32 %v5368_v6, %v5400_v36  ;;  %v5429_v2 = vand.u32 4294901760, %v5403_v9  ;;  %v5432_v13 = vsub.f32 %v4588_v11, %v5393_v4  ;;  %v4596_v49 = vpop.eup %4595 }
 0x14c   :  { %4024 = vmatprep.subr.mxu0 %v5311_v26  ;;  %4072 = vmatprep.subr.mxu1 %v1697_v42  ;;  %v1704_v43 = vand.u32 4294901760, %v1703_v48  ;;  %v5437_v57 = vand.u32 4294901760, %v4594_v27  ;;  %v1732_v25 = vand.u32 4294901760, %v1731_v24  ;;  %v1745_v58 = vsub.f32 %v5388_v3, %v5414_v31  ;;  %v4598_v41 = vpop.eup %4597 }
 0x14d   :  { %4025 = vmatpush3.msra.mxu0 %v5311_v26  ;;  %4073 = vmatpush3.msra.mxu1 %v1697_v42  ;;  %6484 = vst [vmem:[#allocation8_spill] sm:$0xff] %v5429_v2  ;;  %v5449_v18 = vand.u32 4294901760, %v5417_v19  ;;  %v5452_v35 = vsub.f32 %v4590_v29, %v5405_v60  ;;  %v5458_v62 = vand.u32 4294901760, %v1342_v46  ;;  %v1739_v45 = vand.u32 4294901760, %v1738_v0 }
 0x14e   :  { %4026 = vmatprep.subr.mxu0 %v5321_v14  ;;  %4074 = vmatprep.subr.mxu1 %v1704_v43  ;;  %v1752_v11 = vsub.f32 %v5403_v9, %v5429_v2  ;;  %v5464_v42 = vand.u32 4294901760, %v5432_v13  ;;  %v5467_v48 = vsub.f32 %v4592_v40, %v5422_v1  ;;  %v5469_v22 = vand.u32 4294901760, %v4596_v49 }
 0x14f   :  { %4027 = vmatpush3.msra.mxu0 %v5321_v14  ;;  %4075 = vmatpush3.msra.mxu1 %v1704_v43  ;;  %6485 = vst [vmem:[#allocation9_spill] sm:$0xff] %v5449_v18  ;;  %6486 = vst [vmem:[#allocation11_spill] sm:$0xff] %v5458_v62  ;;  %v6423_v29 = vand.u32 4294901760, %v5441_v30  ;;  %v5474_v43 = vsub.f32 %v1341_v8, %v5443_v15  ;;  %v5476_v50 = vand.u32 4294901760, %v1343_v55  ;;  %v1746_v40 = vand.u32 4294901760, %v1745_v58 }
 0x150   :  { %4028 = vmatprep.subr.mxu0 %v5333_v32  ;;  %4076 = vmatprep.subr.mxu1 %v1711_v20  ;;  %6487 = vst [vmem:[#allocation14_spill] sm:$0xff] %v5464_v42  ;;  %v5485_v21 = vand.u32 4294901760, %v5452_v35  ;;  %v5490_v24 = vand.u32 4294901760, %v4598_v41  ;;  %v5494_v8 = vsub.f32 %v1342_v46, %v5458_v62  ;;  %v1766_v0 = vsub.f32 %v5432_v13, %v5464_v42 }
 0x151   :  { %4029 = vmatpush3.msra.mxu0 %v5333_v32  ;;  %4077 = vmatpush3.msra.mxu1 %v1711_v20  ;;  %v1759_v20 = vsub.f32 %v5417_v19, %v5449_v18  ;;  %v1545_v46 = vsub.f32 %v5441_v30, %v6423_v29  ;;  %v5522_v29 = vsub.f32 %v1343_v55, %v5476_v50 }
 0x152   :  { %4030 = vmatprep.subr.mxu0 %v5349_v61  ;;  %4078 = vmatprep.subr.mxu1 %v1718_v59  ;;  %6488 = vst [vmem:[#allocation15_spill] sm:$0xff] %v5485_v21  ;;  %6489 = vst [vmem:[#allocation16_spill] sm:$0xff] %v5490_v24  ;;  %v5527_v58 = vsub.f32 %v4598_v41, %v5490_v24 }
 0x153   :  { %4031 = vmatpush3.msra.mxu0 %v5349_v61  ;;  %4079 = vmatpush3.msra.mxu1 %v1718_v59  ;;  %v5488_v59 = vsub.f32 %v4594_v27, %v5437_v57  ;;  %v5502_v27 = vand.u32 4294901760, %v1344_v39  ;;  %v1760_v42 = vand.u32 4294901760, %v1759_v20  ;;  %v1346_v20 = vld [vmem:[%s6409_s3 + $0x38] sm:$0xff]  ;;  %v1546_v41 = vand.u32 4294901760, %v1545_v46 }
 0x154   :  { %4032 = vmatprep.subr.mxu0 %v5364_v53  ;;  %4080 = vmatprep.subr.mxu1 %v1725_v5  ;;  %v5551_v44 = vand.u32 4294901760, %v1346_v20 }
 0x155   :  { %4033 = vmatpush3.msra.mxu0 %v5364_v53  ;;  %4081 = vmatpush3.msra.mxu1 %v1725_v5  ;;  %v1753_v5 = vand.u32 4294901760, %v1752_v11  ;;  %v1345_v11 = vld [vmem:[%s6409_s3 + $0x30] sm:$0xff]  ;;  %v5519_v18 = vand.u32 4294901760, %v5488_v59  ;;  %v5536_v2 = vsub.f32 %v1344_v39, %v5502_v27 }
 0x156   :  { %4034 = vmatprep.subr.mxu0 %v5378_v28  ;;  %4082 = vmatprep.subr.mxu1 %v1732_v25 }
 0x157   :  { %4035 = vmatpush3.msra.mxu0 %v5378_v28  ;;  %4083 = vmatpush3.msra.mxu1 %v1732_v25  ;;  %v5500_v25 = vand.u32 4294901760, %v5467_v48  ;;  %6491 = vst [vmem:[#allocation18_spill] sm:$0xff] %v5519_v18  ;;  %v1787_v39 = vsub.f32 %v5488_v59, %v5519_v18 }
 0x158   :  { %4036 = vmatprep.subr.mxu0 %v5393_v4  ;;  %4084 = vmatprep.subr.mxu1 %v1739_v45 }
 0x159   :  { %4037 = vmatpush3.msra.mxu0 %v5393_v4  ;;  %4085 = vmatpush3.msra.mxu1 %v1739_v45  ;;  %6490 = vst [vmem:[#allocation17_spill] sm:$0xff] %v5500_v25  ;;  %v5510_v45 = vsub.f32 %v4596_v49, %v5469_v22  ;;  %v1780_v55 = vsub.f32 %v5467_v48, %v5500_v25  ;;  %v6492_v49 = vand.u32 4294901760, %v5474_v43  ;;  %v1788_v12 = vand.u32 4294901760, %v1787_v39 }
 0x15a   :  { %4038 = vmatprep.subr.mxu0 %v5405_v60  ;;  %4086 = vmatprep.subr.mxu1 %v1746_v40 }
 0x15b   :  { %4039 = vmatpush3.msra.mxu0 %v5405_v60  ;;  %4087 = vmatpush3.msra.mxu1 %v1746_v40  ;;  %v1773_v40 = vsub.f32 %v5452_v35, %v5485_v21  ;;  %v1767_v21 = vand.u32 4294901760, %v1766_v0  ;;  %v1555_v31 = vsub.f32 %v5474_v43, %v6492_v49  ;;  %v5545_v36 = vand.u32 4294901760, %v5510_v45 }
 0x15c   :  { %4040 = vmatprep.subr.mxu0 %v5422_v1  ;;  %4088 = vmatprep.subr.mxu1 %v1753_v5  ;;  %v5558_v49 = vand.u32 4294901760, %v5527_v58  ;;  %v1781_v25 = vand.u32 4294901760, %v1780_v55  ;;  %v6495_v55 = vand.u32 4294901760, %v5522_v29 }
 0x15d   :  { %4041 = vmatpush3.msra.mxu0 %v5422_v1  ;;  %4089 = vmatpush3.msra.mxu1 %v1753_v5  ;;  %v5538_v5 = vand.u32 4294901760, %v1345_v11  ;;  %6493 = vst [vmem:[#allocation19_spill] sm:$0xff] %v5545_v36  ;;  %v1774_v0 = vand.u32 4294901760, %v1773_v40  ;;  %v1347_v40 = vld [vmem:[%s6409_s3 + $0x40] sm:$0xff] }
 0x15e   :  { %4042 = vmatprep.subr.mxu0 %v5437_v57  ;;  %4090 = vmatprep.subr.mxu1 %v1760_v42  ;;  %v1575_v18 = vsub.f32 %v5522_v29, %v6495_v55 }
 0x15f   :  { %4043 = vmatpush3.msra.mxu0 %v5437_v57  ;;  %4091 = vmatpush3.msra.mxu1 %v1760_v42  ;;  %v6494_v42 = vand.u32 4294901760, %v5494_v8  ;;  %v5566_v17 = vsub.f32 %v1345_v11, %v5538_v5  ;;  %v5578_v11 = vsub.f32 %v1346_v20, %v5551_v44  ;;  %v5590_v20 = vand.u32 4294901760, %v1348_v38 }
 0x160   :  { %4044 = vmatprep.subr.mxu0 %v5469_v22  ;;  %4092 = vmatprep.subr.mxu1 %v1767_v21 }
 0x161   :  { %4045 = vmatpush3.msra.mxu0 %v5469_v22  ;;  %4093 = vmatpush3.msra.mxu1 %v1767_v21  ;;  %v1565_v46 = vsub.f32 %v5494_v8, %v6494_v42  ;;  %v1556_v21 = vand.u32 4294901760, %v1555_v31  ;;  %v1794_v42 = vsub.f32 %v5510_v45, %v5545_v36 }
 0x162   :  { %4046 = vmatprep.subr.mxu0 %v5490_v24  ;;  %4094 = vmatprep.subr.mxu1 %v1774_v0 }
 0x163   :  { %4047 = vmatpush3.msra.mxu0 %v5490_v24  ;;  %4095 = vmatpush3.msra.mxu1 %v1774_v0  ;;  %v5580_v24 = vand.u32 4294901760, %v1347_v40  ;;  %v1566_v31 = vand.u32 4294901760, %v1565_v46  ;;  %v1801_v0 = vsub.f32 %v5527_v58, %v5558_v49  ;;  %v1795_v36 = vand.u32 4294901760, %v1794_v42 }
 0x164   :  { %4049 = vmatmul.mubr.f32.vlgmr.msra.gmra.mxu0 %v1546_v41  ;;  %4096 = vmatprep.subr.mxu1 %v1781_v25  ;;  %v6496_v41 = vand.u32 4294901760, %v5536_v2  ;;  %v6450_v46 = vand.u32 4294901760, %v5578_v11 }
 0x165   :  { %4128 = vmatprep.subr.mxu0 %v5327_v10  ;;  %4097 = vmatpush3.msra.mxu1 %v1781_v25  ;;  %v1349_v25 = vld [vmem:[%s6409_s3 + $0x50] sm:$0xff]  ;;  %v1802_v55 = vand.u32 4294901760, %v1801_v0 }
 0x166   :  { %4129 = vmatpush3.msra.mxu0 %v5327_v10  ;;  %4098 = vmatprep.subr.mxu1 %v1788_v12  ;;  %v1585_v39 = vsub.f32 %v5536_v2, %v6496_v41  ;;  %v1576_v10 = vand.u32 4294901760, %v1575_v18  ;;  %v5599_v41 = vsub.f32 %v1347_v40, %v5580_v24  ;;  %v5609_v18 = vsub.f32 %v1348_v38, %v5590_v20  ;;  %v1351_v38 = vld [vmem:[%s6409_s3 + $0x60] sm:$0xff] }
 0x167   :  { %4130 = vmatprep.subr.mxu0 %v5341_v37  ;;  %4051 = vmatprep.mubr.f32.mxu0 %v1556_v21  ;;  %v1350_v21 = vld [vmem:[%s6409_s3 + $0x58] sm:$0xff]  ;;  %v5611_v40 = vand.u32 4294901760, %v1349_v25 }
 0x168   :  { %4099 = vmatpush3.msra.mxu1 %v1788_v12  ;;  %4131 = vmatpush3.msra.mxu0 %v5341_v37  ;;  %v1586_v42 = vand.u32 4294901760, %v1585_v39  ;;  %v6497_v12 = vand.u32 4294901760, %v5566_v17  ;;  %v5619_v0 = vand.u32 4294901760, %v1350_v21  ;;  %v6449_v39 = vand.u32 4294901760, %v5609_v18 }
 0x169   :  { %4052 = vmatmul.mubr.f32.gmra.mxu0 %v1566_v31  ;;  %4100 = vmatprep.subr.mxu1 %v1795_v36  ;;  %v6448_v31 = vand.u32 4294901760, %v5599_v41 }
 0x16a   :  { %4132 = vmatprep.subr.mxu0 %v5316_v51  ;;  %4101 = vmatpush3.msra.mxu1 %v1795_v36  ;;  %v1595_v37 = vsub.f32 %v5566_v17, %v6497_v12  ;;  %v1605_v36 = vsub.f32 %v5578_v11, %v6450_v46  ;;  %v5643_v12 = vand.u32 4294901760, %v1351_v38 }
 0x16b   :  { %4133 = vmatpush3.msra.mxu0 %v5316_v51  ;;  %4102 = vmatprep.subr.mxu1 %v1802_v55 }
 0x16c   :  { %4134 = vmatprep.subr.mxu0 %v5330_v63  ;;  %4054 = vmatprep.mubr.f32.mxu0 %v1576_v10  ;;  %v1596_v51 = vand.u32 4294901760, %v1595_v37  ;;  %v5628_v10 = vsub.f32 %v1349_v25, %v5611_v40  ;;  %v5641_v25 = vsub.f32 %v1350_v21, %v5619_v0  ;;  %v1353_v21 = vld [vmem:[%s6409_s3 + $0x70] sm:$0xff] }
 0x16d   :  { %4103 = vmatpush3.msra.mxu1 %v1802_v55  ;;  %4135 = vmatpush3.msra.mxu0 %v5330_v63  ;;  %v1352_v63 = vld [vmem:[%s6409_s3 + $0x68] sm:$0xff]  ;;  %v1606_v55 = vand.u32 4294901760, %v1605_v36  ;;  %v5677_v46 = vand.u32 4294901760, %v1353_v21 }
 0x16e   :  { %4055 = vmatmul.mubr.f32.gmra.mxu0 %v1586_v42  ;;  %4105 = vmatmul.mubr.f32.vlgmr.msra.gmra.mxu1 %v5408_v56  ;;  %v1615_v42 = vsub.f32 %v5599_v41, %v6448_v31  ;;  %v6453_v37 = vand.u32 4294901760, %v5628_v10  ;;  %v5652_v36 = vand.u32 4294901760, %v1352_v63  ;;  %v1644_v31 = vand.u32 4294901760, %v5641_v25 }
 0x16f   :  { %4136 = vmatprep.subr.mxu0 %v5347_v34  ;;  %4184 = vmatprep.subr.mxu1 %v5313_v16 }
 0x170   :  { %4137 = vmatpush3.msra.mxu0 %v5347_v34  ;;  %4185 = vmatpush3.msra.mxu1 %v5313_v16  ;;  %v1625_v34 = vsub.f32 %v5609_v18, %v6449_v39  ;;  %v5662_v39 = vsub.f32 %v1351_v38, %v5643_v12  ;;  %v5675_v38 = vsub.f32 %v1352_v63, %v5652_v36 }
 0x171   :  { %4138 = vmatprep.subr.mxu0 %v5362_v23  ;;  %4186 = vmatprep.subr.mxu1 %v5323_v52 }
 0x172   :  { %4057 = vmatprep.mubr.f32.mxu0 %v1596_v51  ;;  %4107 = vmatprep.mubr.f32.mxu1 %v5443_v15  ;;  %v1616_v51 = vand.u32 4294901760, %v1615_v42  ;;  %v1635_v42 = vsub.f32 %v5628_v10, %v6453_v37  ;;  %v5693_v37 = vsub.f32 %v1353_v21, %v5677_v46 }
 0x173   :  { %4139 = vmatpush3.msra.mxu0 %v5362_v23  ;;  %4187 = vmatpush3.msra.mxu1 %v5323_v52  ;;  %v1354_v23 = vld [vmem:[%s6409_s3 + $0x78] sm:$0xff] }
 0x174   :  { %4058 = vmatmul.mubr.f32.gmra.mxu0 %v1606_v55  ;;  %4108 = vmatmul.mubr.f32.gmra.mxu1 %v5458_v62  ;;  %v1626_v55 = vand.u32 4294901760, %v1625_v34  ;;  %v1654_v34 = vand.u32 4294901760, %v5662_v39  ;;  %v5686_v62 = vand.u32 4294901760, %v1354_v23  ;;  %v1636_v63 = vand.u32 4294901760, %v1635_v42 }
 0x175   :  { %4140 = vmatprep.subr.mxu0 %v5368_v6  ;;  %4188 = vmatprep.subr.mxu1 %v5304_v7  ;;  %v1674_v21 = vand.u32 4294901760, %v5693_v37 }
 0x176   :  { %4141 = vmatpush3.msra.mxu0 %v5368_v6  ;;  %4189 = vmatpush3.msra.mxu1 %v5304_v7  ;;  %v1645_v6 = vsub.f32 %v5641_v25, %v1644_v31  ;;  %v5703_v42 = vsub.f32 %v1354_v23, %v5686_v62 }
 0x177   :  { %4142 = vmatprep.subr.mxu0 %v5388_v3  ;;  %4190 = vmatprep.subr.mxu1 %v5307_v54 }
 0x178   :  { %4060 = vmatprep.mubr.f32.mxu0 %v1616_v51  ;;  %4110 = vmatprep.mubr.f32.mxu1 %v5476_v50  ;;  %v1664_v51 = vand.u32 4294901760, %v5675_v38 }
 0x179   :  { %4143 = vmatpush3.msra.mxu0 %v5388_v3  ;;  %4191 = vmatpush3.msra.mxu1 %v5307_v54  ;;  %v1646_v3 = vand.u32 4294901760, %v1645_v6  ;;  %v1684_v6 = vand.u32 4294901760, %v5703_v42 }
 0x17a   :  { %4061 = vmatmul.mubr.f32.gmra.mxu0 %v1626_v55  ;;  %4111 = vmatmul.mubr.f32.gmra.mxu1 %v5502_v27  ;;  %v1655_v55 = vsub.f32 %v5662_v39, %v1654_v34 }
 0x17b   :  { %4144 = vmatprep.subr.mxu0 %v5403_v9  ;;  %4192 = vmatprep.subr.mxu1 %v5311_v26 }
 0x17c   :  { %4145 = vmatpush3.msra.mxu0 %v5403_v9  ;;  %4193 = vmatpush3.msra.mxu1 %v5311_v26  ;;  %v1665_v9 = vsub.f32 %v5675_v38, %v1664_v51  ;;  %v1656_v23 = vand.u32 4294901760, %v1655_v55 }
 0x17d   :  { %4146 = vmatprep.subr.mxu0 %v5417_v19  ;;  %4194 = vmatprep.subr.mxu1 %v5321_v14 }
 0x17e   :  { %4063 = vmatprep.mubr.f32.mxu0 %v1636_v63  ;;  %4113 = vmatprep.mubr.f32.mxu1 %v5538_v5  ;;  %v1666_v63 = vand.u32 4294901760, %v1665_v9  ;;  %v6505_v9 = vld [vmem:[#allocation5_spill] sm:$0xff] }
 0x17f   :  { %4147 = vmatpush3.msra.mxu0 %v5417_v19  ;;  %4195 = vmatpush3.msra.mxu1 %v5321_v14  ;;  %v1675_v19 = vsub.f32 %v5693_v37, %v1674_v21 }
 0x180   :  { %4064 = vmatmul.mubr.f32.gmra.mxu0 %v1646_v3  ;;  %4114 = vmatmul.mubr.f32.gmra.mxu1 %v5551_v44  ;;  %v1685_v3 = vsub.f32 %v5703_v42, %v1684_v6 }
 0x181   :  { %4148 = vmatprep.subr.mxu0 %v5432_v13  ;;  %4196 = vmatprep.subr.mxu1 %v5333_v32 }
 0x182   :  { %4149 = vmatpush3.msra.mxu0 %v5432_v13  ;;  %4197 = vmatpush3.msra.mxu1 %v5333_v32  ;;  %v1676_v13 = vand.u32 4294901760, %v1675_v19  ;;  %v1686_v55 = vand.u32 4294901760, %v1685_v3 }
 0x183   :  { %4150 = vmatprep.subr.mxu0 %v5452_v35  ;;  %4198 = vmatprep.subr.mxu1 %v5349_v61 }
 0x184   :  { %4066 = vmatprep.mubr.f32.mxu0 %v1656_v23  ;;  %4116 = vmatprep.mubr.f32.mxu1 %v5580_v24  ;;  %v6506_v23 = vand.u32 4294901760, %v5474_v43 }
 0x185   :  { %4151 = vmatpush3.msra.mxu0 %v5452_v35  ;;  %4199 = vmatpush3.msra.mxu1 %v5349_v61  ;;  %v6498_v35 = vld [vmem:[#allocation4_spill] sm:$0xff] }
 0x186   :  { %4067 = vmatmul.mubr.f32.gmra.mxu0 %v1666_v63  ;;  %4117 = vmatmul.mubr.f32.gmra.mxu1 %v5590_v20  ;;  %v6508_v63 = vld [vmem:[#allocation7_spill] sm:$0xff] }
 0x187   :  { %4152 = vmatprep.subr.mxu0 %v5467_v48  ;;  %4200 = vmatprep.subr.mxu1 %v5364_v53 }
 0x188   :  { %4153 = vmatpush3.msra.mxu0 %v5467_v48  ;;  %4201 = vmatpush3.msra.mxu1 %v5364_v53  ;;  %v6499_v48 = vld [vmem:[#allocation10_spill] sm:$0xff] }
 0x189   :  { %4154 = vmatprep.subr.mxu0 %v5488_v59  ;;  %4202 = vmatprep.subr.mxu1 %v5378_v28 }
 0x18a   :  { %4069 = vmatprep.mubr.f32.mxu0 %v1676_v13  ;;  %4119 = vmatprep.mubr.f32.mxu1 %v5611_v40 }
 0x18b   :  { %4155 = vmatpush3.msra.mxu0 %v5488_v59  ;;  %4203 = vmatpush3.msra.mxu1 %v5378_v28  ;;  %v6501_v59 = vld [vmem:[#allocation12_spill] sm:$0xff] }
 0x18c   :  { %4070 = vmatmul.mubr.f32.gmra.mxu0 %v1686_v55  ;;  %4120 = vmatmul.mubr.f32.gmra.mxu1 %v5619_v0 }
 0x18d   :  { %4156 = vmatprep.subr.mxu0 %v5510_v45  ;;  %4204 = vmatprep.subr.mxu1 %v5393_v4 }
 0x18e   :  { %4157 = vmatpush3.msra.mxu0 %v5510_v45  ;;  %4205 = vmatpush3.msra.mxu1 %v5393_v4  ;;  %v6504_v45 = vld [vmem:[#allocation13_spill] sm:$0xff] }
 0x18f   :  { %4158 = vmatprep.subr.mxu0 %v5527_v58  ;;  %4206 = vmatprep.subr.mxu1 %v5405_v60 }
 0x190   :  { %4122 = vmatprep.mubr.f32.mxu1 %v5643_v12  ;;  %4159 = vmatpush3.msra.mxu0 %v5527_v58  ;;  %v6503_v58 = vand.u32 4294901760, %v5441_v30 }
 0x191   :  { %4160 = vmatprep.mubr.f32.mxu0 %v6498_v35  ;;  %4207 = vmatpush3.msra.mxu1 %v5405_v60 }
 0x192   :  { %4123 = vmatmul.mubr.f32.gmra.mxu1 %v5652_v36  ;;  %4161 = vmatmul.mubr.f32.vlgmr.msra.gmra.mxu0 %v5441_v30  ;;  %v6507_v30 = vand.u32 4294901760, %v5494_v8 }
 0x193   :  { %4208 = vmatprep.subr.mxu1 %v5422_v1  ;;  %4240 = vmatprep.subr.mxu0 %v5338_v33 }
 0x194   :  { %4209 = vmatpush3.msra.mxu1 %v5422_v1  ;;  %4241 = vmatpush3.msra.mxu0 %v5338_v33  ;;  %v6500_v33 = vld [vmem:[#allocation16_spill] sm:$0xff] }
 0x195   :  { %4210 = vmatprep.subr.mxu1 %v5437_v57  ;;  %4242 = vmatprep.subr.mxu0 %v5356_v47 }
 0x196   :  { %4125 = vmatprep.mubr.f32.mxu1 %v5677_v46  ;;  %4163 = vmatprep.mubr.f32.mxu0 %v5474_v43  ;;  %v6511_v43 = vand.u32 4294901760, %v5536_v2 }
 0x197   :  { %4211 = vmatpush3.msra.mxu1 %v5437_v57  ;;  %4243 = vmatpush3.msra.mxu0 %v5356_v47  ;;  %v6502_v47 = vand.u32 4294901760, %v6498_v35 }
 0x198   :  { %4126 = vmatmul.mubr.f32.gmra.mxu1 %v5686_v62  ;;  %4164 = vmatmul.mubr.f32.gmra.mxu0 %v5494_v8  ;;  %v6512_v8 = vld [vmem:[#allocation8_spill] sm:$0xff] }
 0x199   :  { %4212 = vmatprep.subr.mxu1 %v5469_v22  ;;  %4244 = vmatprep.subr.mxu0 %v6499_v48 }
 0x19a   :  { %4213 = vmatpush3.msra.mxu1 %v5469_v22  ;;  %4245 = vmatpush3.msra.mxu0 %v6499_v48 }
 0x19b   :  { %4214 = vmatprep.subr.mxu1 %v6500_v33  ;;  %4246 = vmatprep.subr.mxu0 %v6501_v59 }
 0x19c   :  { %4166 = vmatprep.mubr.f32.mxu0 %v5522_v29  ;;  %4215 = vmatpush3.msra.mxu1 %v6500_v33 }
 0x19d   :  { %4216 = vmatprep.mubr.f32.mxu1 %v6502_v47  ;;  %4247 = vmatpush3.msra.mxu0 %v6501_v59 }
 0x19e   :  { %4167 = vmatmul.mubr.f32.gmra.mxu0 %v5536_v2  ;;  %4217 = vmatmul.mubr.f32.vlgmr.msra.gmra.mxu1 %v6503_v58  ;;  %v6515_v2 = vand.u32 4294901760, %v5578_v11 }
 0x19f   :  { %4248 = vmatprep.subr.mxu0 %v6504_v45  ;;  %4296 = vmatprep.subr.mxu1 %v5313_v16 }
 0x1a0   :  { %4249 = vmatpush3.msra.mxu0 %v6504_v45  ;;  %4297 = vmatpush3.msra.mxu1 %v5313_v16  ;;  %v6509_v16 = vld [vmem:[#allocation6_spill] sm:$0xff] }
 0x1a1   :  { %4250 = vmatprep.subr.mxu0 %v6505_v9  ;;  %4298 = vmatprep.subr.mxu1 %v5323_v52 }
 0x1a2   :  { %4169 = vmatprep.mubr.f32.mxu0 %v5566_v17  ;;  %4219 = vmatprep.mubr.f32.mxu1 %v6506_v23 }
 0x1a3   :  { %4251 = vmatpush3.msra.mxu0 %v6505_v9  ;;  %4299 = vmatpush3.msra.mxu1 %v5323_v52  ;;  %v6510_v52 = vand.u32 4294901760, %v5522_v29  ;;  %v6516_v29 = vld [vmem:[#allocation14_spill] sm:$0xff] }
 0x1a4   :  { %4170 = vmatmul.mubr.f32.gmra.mxu0 %v5578_v11  ;;  %4220 = vmatmul.mubr.f32.gmra.mxu1 %v6507_v30  ;;  %v6520_v11 = vld [vmem:[#allocation17_spill] sm:$0xff] }
 0x1a5   :  { %4252 = vmatprep.subr.mxu0 %v6508_v63  ;;  %4300 = vmatprep.subr.mxu1 %v5304_v7 }
 0x1a6   :  { %4253 = vmatpush3.msra.mxu0 %v6508_v63  ;;  %4301 = vmatpush3.msra.mxu1 %v5304_v7  ;;  %v6513_v7 = vld [vmem:[#allocation9_spill] sm:$0xff] }
 0x1a7   :  { %4254 = vmatprep.subr.mxu0 %v6509_v16  ;;  %4302 = vmatprep.subr.mxu1 %v5307_v54 }
 0x1a8   :  { %4172 = vmatprep.mubr.f32.mxu0 %v5599_v41  ;;  %4222 = vmatprep.mubr.f32.mxu1 %v6510_v52 }
 0x1a9   :  { %4255 = vmatpush3.msra.mxu0 %v6509_v16  ;;  %4303 = vmatpush3.msra.mxu1 %v5307_v54  ;;  %v6514_v54 = vand.u32 4294901760, %v5566_v17  ;;  %v6519_v17 = vand.u32 4294901760, %v5609_v18 }
 0x1aa   :  { %4173 = vmatmul.mubr.f32.gmra.mxu0 %v5609_v18  ;;  %4223 = vmatmul.mubr.f32.gmra.mxu1 %v6511_v43 }
 0x1ab   :  { %4256 = vmatprep.subr.mxu0 %v6512_v8  ;;  %4304 = vmatprep.subr.mxu1 %v5311_v26 }
 0x1ac   :  { %4257 = vmatpush3.msra.mxu0 %v6512_v8  ;;  %4305 = vmatpush3.msra.mxu1 %v5311_v26  ;;  %v6517_v26 = vld [vmem:[#allocation15_spill] sm:$0xff] }
 0x1ad   :  { %4258 = vmatprep.subr.mxu0 %v6513_v7  ;;  %4306 = vmatprep.subr.mxu1 %v5321_v14 }
 0x1ae   :  { %4175 = vmatprep.mubr.f32.mxu0 %v5628_v10  ;;  %4225 = vmatprep.mubr.f32.mxu1 %v6514_v54 }
 0x1af   :  { %4259 = vmatpush3.msra.mxu0 %v6513_v7  ;;  %4307 = vmatpush3.msra.mxu1 %v5321_v14  ;;  %v6518_v14 = vand.u32 4294901760, %v5599_v41  ;;  %v6523_v41 = vld [vmem:[#allocation19_spill] sm:$0xff] }
 0x1b0   :  { %4176 = vmatmul.mubr.f32.gmra.mxu0 %v5641_v25  ;;  %4226 = vmatmul.mubr.f32.gmra.mxu1 %v6515_v2 }
 0x1b1   :  { %4260 = vmatprep.subr.mxu0 %v6516_v29  ;;  %4308 = vmatprep.subr.mxu1 %v5333_v32 }
 0x1b2   :  { %4261 = vmatpush3.msra.mxu0 %v6516_v29  ;;  %4309 = vmatpush3.msra.mxu1 %v5333_v32  ;;  %v6521_v32 = vld [vmem:[#allocation18_spill] sm:$0xff] }
 0x1b3   :  { %4262 = vmatprep.subr.mxu0 %v6517_v26  ;;  %4310 = vmatprep.subr.mxu1 %v5349_v61 }
 0x1b4   :  { %4178 = vmatprep.mubr.f32.mxu0 %v5662_v39  ;;  %4228 = vmatprep.mubr.f32.mxu1 %v6518_v14 }
 0x1b5   :  { %4263 = vmatpush3.msra.mxu0 %v6517_v26  ;;  %4311 = vmatpush3.msra.mxu1 %v5349_v61  ;;  %v6522_v61 = vand.u32 4294901760, %v5628_v10  ;;  %v6454_v10 = vmov 0.0  }
 0x1b6   :  { %4179 = vmatmul.mubr.f32.gmra.mxu0 %v5675_v38  ;;  %4229 = vmatmul.mubr.f32.gmra.mxu1 %v6519_v17 }
 0x1b7   :  { %4264 = vmatprep.subr.mxu0 %v6520_v11  ;;  %4312 = vmatprep.subr.mxu1 %v5364_v53 }
 0x1b8   :  { %4265 = vmatpush3.msra.mxu0 %v6520_v11  ;;  %4313 = vmatpush3.msra.mxu1 %v5364_v53  ;;  %v6524_v53 = vld [vmem:[#allocation3_spill] sm:$0xff] }
 0x1b9   :  { %4266 = vmatprep.subr.mxu0 %v6521_v32  ;;  %4314 = vmatprep.subr.mxu1 %v5378_v28 }
 0x1ba   :  { %4181 = vmatprep.mubr.f32.mxu0 %v5693_v37  ;;  %4231 = vmatprep.mubr.f32.mxu1 %v6522_v61 }
 0x1bb   :  { %4267 = vmatpush3.msra.mxu0 %v6521_v32  ;;  %4315 = vmatpush3.msra.mxu1 %v5378_v28  ;;  %v6525_v28 = vld [vmem:[#allocation11_spill] sm:$0xff] }
 0x1bc   :  { %4182 = vmatmul.mubr.f32.gmra.mxu0 %v5703_v42  ;;  %4232 = vmatmul.mubr.f32.gmra.mxu1 %v1644_v31 }
 0x1bd   :  { %4268 = vmatprep.subr.mxu0 %v6523_v41  ;;  %4316 = vmatprep.subr.mxu1 %v5393_v4 }
 0x1be   :  { %4269 = vmatpush3.msra.mxu0 %v6523_v41  ;;  %4317 = vmatpush3.msra.mxu1 %v5393_v4  ;;  %v5908_v4 = vpop.permute.xlu1 %1443 }
 0x1bf   :  { %4270 = vmatprep.subr.mxu0 %v5558_v49  ;;  %4318 = vmatprep.subr.mxu1 %v5405_v60 }
 0x1c0   :  { %4234 = vmatprep.mubr.f32.mxu1 %v1654_v34  ;;  %4271 = vmatpush3.msra.mxu0 %v5558_v49 }
 0x1c1   :  { %4272 = vmatprep.mubr.f32.mxu0 %v6524_v53  ;;  %4319 = vmatpush3.msra.mxu1 %v5405_v60 }
 0x1c2   :  { %4235 = vmatmul.mubr.f32.gmra.mxu1 %v1664_v51  ;;  %4273 = vmatmul.mubr.f32.vlgmr.msra.gmra.mxu0 %v5408_v56 }
 0x1c3   :  { %4320 = vmatprep.subr.mxu1 %v5422_v1  ;;  %4237 = vmatprep.mubr.f32.mxu1 %v1674_v21 }
 0x1c4   :  { %4321 = vmatpush3.msra.mxu1 %v5422_v1  ;;  %4275 = vmatprep.mubr.f32.mxu0 %v5443_v15 }
 0x1c5   :  { %4322 = vmatprep.subr.mxu1 %v5437_v57  ;;  %4352 = vmatprep.subr.mxu0 %v6454_v10 }
 0x1c6   :  { %4323 = vmatpush3.msra.mxu1 %v5437_v57  ;;  %4276 = vmatmul.mubr.f32.gmra.mxu0 %v6525_v28 }
 0x1c7   :  { %4238 = vmatmul.mubr.f32.gmra.mxu1 %v1684_v6  ;;  %4324 = vmatprep.subr.mxu1 %v5469_v22 }
 0x1c8   :  { %4325 = vmatpush3.msra.mxu1 %v5469_v22  ;;  %4278 = vmatprep.mubr.f32.mxu0 %v5476_v50 }
 0x1c9   :  { %4326 = vmatprep.subr.mxu1 %v6500_v33  ;;  %4328 = vmatprep.mubr.f32.mxu1 %v6524_v53 }
 0x1ca   :  { %4327 = vmatpush3.msra.mxu1 %v6500_v33  ;;  %4279 = vmatmul.mubr.f32.gmra.mxu0 %v5502_v27 }
 0x1cb   :  { %4329 = vmatmul.mubr.f32.vlgmr.msra.gmra.mxu1 %v5408_v56  ;;  %4281 = vmatprep.mubr.f32.mxu0 %v5538_v5  ;;  %v5912_v56 = vpop.permute.xlu1 %1433 }
 0x1cc   :  { %4331 = vmatprep.mubr.f32.mxu1 %v5443_v15  ;;  %4387 = vmatprep.subr.mxu1 %v6454_v10 }
 0x1ce   :  { %4282 = vmatmul.mubr.f32.gmra.mxu0 %v5551_v44 }
 0x1cf   :  { %4332 = vmatmul.mubr.f32.gmra.mxu1 %v6525_v28  ;;  %4284 = vmatprep.mubr.f32.mxu0 %v5580_v24  ;;  %v1424_v57 = vpop.permute.xlu1 %1423 }
 0x1d0   :  { %4334 = vmatprep.mubr.f32.mxu1 %v5476_v50 }
 0x1d2   :  { %4285 = vmatmul.mubr.f32.gmra.mxu0 %v5590_v20 }
 0x1d3   :  { %4335 = vmatmul.mubr.f32.gmra.mxu1 %v5502_v27  ;;  %4287 = vmatprep.mubr.f32.mxu0 %v5611_v40  ;;  %v1414_v22 = vpop.permute.xlu1 %1413 }
 0x1d4   :  { %4337 = vmatprep.mubr.f32.mxu1 %v5538_v5 }
 0x1d6   :  { %4288 = vmatmul.mubr.f32.gmra.mxu0 %v5619_v0 }
 0x1d7   :  { %4338 = vmatmul.mubr.f32.gmra.mxu1 %v5551_v44  ;;  %4290 = vmatprep.mubr.f32.mxu0 %v5643_v12  ;;  %v5906_v44 = vpop.permute.xlu0 %1448 }
 0x1d8   :  { %4340 = vmatprep.mubr.f32.mxu1 %v5580_v24  ;;  %v1404_v24 = vpop.permute.xlu1 %1403 }
 0x1da   :  { %4291 = vmatmul.mubr.f32.gmra.mxu0 %v5652_v36 }
 0x1db   :  { %4341 = vmatmul.mubr.f32.gmra.mxu1 %v5590_v20  ;;  %4293 = vmatprep.mubr.f32.mxu0 %v5677_v46  ;;  %v5910_v60 = vpop.permute.xlu0 %1438 }
 0x1dc   :  { %4343 = vmatprep.mubr.f32.mxu1 %v5611_v40  ;;  %v1394_v5 = vpop.permute.xlu1 %1393 }
 0x1de   :  { %4294 = vmatmul.mubr.f32.gmra.mxu0 %v5686_v62 }
 0x1df   :  { %4344 = vmatmul.mubr.f32.gmra.mxu1 %v5619_v0  ;;  %v1429_v1 = vpop.permute.xlu0 %1428  ;;  %4384 = vmatprep.mubr.msk.f32.mxu0 %vm4633_vm1, %v6454_v10 }
 0x1e0   :  { %4346 = vmatprep.mubr.f32.mxu1 %v5643_v12 }
 0x1e3   :  { %4347 = vmatmul.mubr.f32.gmra.mxu1 %v5652_v36  ;;  %v1419_v15 = vpop.permute.xlu0 %1418 }
 0x1e4   :  { %4349 = vmatprep.mubr.f32.mxu1 %v5677_v46 }
 0x1e7   :  { %4350 = vmatmul.mubr.f32.gmra.mxu1 %v5686_v62  ;;  %v1409_v50 = vpop.permute.xlu0 %1408  ;;  %v1384_v62 = vpop.permute.xlu1 %1383 }
 0x1e8   :  { %4419 = vmatprep.mubr.msk.f32.mxu1 %vm4633_vm1, %v6454_v10 }
 0x1eb   :  { %v1399_v27 = vpop.permute.xlu0 %1398  ;;  %v1374_v0 = vpop.permute.xlu1 %1373 }
 0x1ef   :  { %v1389_v20 = vpop.permute.xlu0 %1388 }
 0x1f3   :  { %v1379_v31 = vpop.permute.xlu0 %1378 }
 0x224   :  { %v4050_v49 = vpop.f32.mrf.mxu0 }
 0x225   :  { %v1549_v39 = vadd.f32 %v4050_v49, %v1379_v31 }
 0x226   :  { %v1538_v46 = vpop.f32.mrf.mxu0 }
 0x227   :  { %v1539_v37 = vadd.f32 %v1538_v46, %v1374_v0 }
 0x229   :  { %v4053_v18 = vpop.f32.mrf.mxu0 }
 0x22a   :  { %v1569_v42 = vadd.f32 %v4053_v18, %v1389_v20 }
 0x22b   :  { %v1558_v40 = vpop.f32.mrf.mxu0 }
 0x22c   :  { %v1559_v19 = vadd.f32 %v1558_v40, %v1384_v62 }
 0x22e   :  { %v4056_v25 = vpop.f32.mrf.mxu0  ;;  %v4106_v12 = vpop.f32.mrf.mxu1 }
 0x22f   :  { %v1846_v36 = vadd.f32 %v4106_v12, %v1549_v39  ;;  %v1589_v48 = vadd.f32 %v4056_v25, %v1399_v27 }
 0x230   :  { %v1578_v38 = vpop.f32.mrf.mxu0  ;;  %v1839_v34 = vpop.f32.mrf.mxu1 }
 0x231   :  { %v1840_v51 = vadd.f32 %v1839_v34, %v1539_v37  ;;  %v1579_v47 = vadd.f32 %v1578_v38, %v1394_v5 }
 0x234   :  { %v4059_v21 = vpop.f32.mrf.mxu0  ;;  %v4109_v6 = vpop.f32.mrf.mxu1 }
 0x235   :  { %v1858_v3 = vadd.f32 %v4109_v6, %v1569_v42  ;;  %v1609_v30 = vadd.f32 %v4059_v21, %v1409_v50 }
 0x236   :  { %v1598_v13 = vpop.f32.mrf.mxu0  ;;  %v1851_v55 = vpop.f32.mrf.mxu1 }
 0x237   :  { %v1852_v35 = vadd.f32 %v1851_v55, %v1559_v19  ;;  %v1599_v52 = vadd.f32 %v1598_v13, %v1404_v24 }
 0x23a   :  { %v4062_v33 = vpop.f32.mrf.mxu0  ;;  %v4112_v59 = vpop.f32.mrf.mxu1 }
 0x23b   :  { %v1870_v58 = vadd.f32 %v4112_v59, %v1589_v48  ;;  %v1629_v2 = vadd.f32 %v4062_v33, %v1419_v15 }
 0x23c   :  { %v1618_v45 = vpop.f32.mrf.mxu0  ;;  %v1863_v9 = vpop.f32.mrf.mxu1 }
 0x23d   :  { %v1864_v23 = vadd.f32 %v1863_v9, %v1579_v47  ;;  %v1619_v14 = vadd.f32 %v1618_v45, %v1414_v22 }
 0x240   :  { %v4065_v63 = vpop.f32.mrf.mxu0  ;;  %v4115_v16 = vpop.f32.mrf.mxu1 }
 0x241   :  { %v5916_v43 = vadd.f32 %v4115_v16, %v1609_v30  ;;  %v1649_v41 = vadd.f32 %v4065_v63, %v1429_v1 }
 0x242   :  { %v1638_v8 = vpop.f32.mrf.mxu0  ;;  %v1875_v7 = vpop.f32.mrf.mxu1 }
 0x243   :  { %v5918_v54 = vadd.f32 %v1875_v7, %v1599_v52  ;;  %v1639_v50 = vadd.f32 %v1638_v8, %v1424_v57 }
 0x246   :  { %v4068_v29 = vpop.f32.mrf.mxu0  ;;  %v4118_v26 = vpop.f32.mrf.mxu1 }
 0x247   :  { %v5920_v17 = vadd.f32 %v4118_v26, %v1629_v2  ;;  %v1669_v22 = vadd.f32 %v4068_v29, %v5910_v60 }
 0x248   :  { %v1658_v11 = vpop.f32.mrf.mxu0  ;;  %v1887_v32 = vpop.f32.mrf.mxu1 }
 0x249   :  { %v5922_v61 = vadd.f32 %v1887_v32, %v1619_v14  ;;  %v1659_v46 = vadd.f32 %v1658_v11, %v5912_v56 }
 0x24c   :  { %v5924_v53 = vpop.f32.mrf.mxu0  ;;  %v4121_v28 = vpop.f32.mrf.mxu1 }
 0x24d   :  { %v5926_v24 = vadd.f32 %v4121_v28, %v1649_v41 }
 0x24e   :  { %v5928_v27 = vpop.f32.mrf.mxu0  ;;  %v1899_v5 = vpop.f32.mrf.mxu1 }
 0x24f   :  { %v5930_v15 = vadd.f32 %v1899_v5, %v1639_v50 }
 0x252   :  { %v4124_v49 = vpop.f32.mrf.mxu1  ;;  %v4162_v20 = vpop.f32.mrf.mxu0 }
 0x253   :  { %v5934_v62 = vadd.f32 %v4124_v49, %v1669_v22  ;;  %v2041_v1 = vadd.f32 %v4162_v20, %v1846_v36 }
 0x254   :  { %v1911_v18 = vpop.f32.mrf.mxu1  ;;  %v2033_v40 = vpop.f32.mrf.mxu0 }
 0x255   :  { %v5936_v31 = vadd.f32 %v1911_v18, %v1659_v46  ;;  %v2034_v57 = vadd.f32 %v2033_v40, %v1840_v51 }
 0x258   :  { %v5938_v0 = vpop.f32.mrf.mxu1  ;;  %v4165_v39 = vpop.f32.mrf.mxu0 }
 0x259   :  { %v2055_v25 = vadd.f32 %v4165_v39, %v1858_v3 }
 0x25a   :  { %v5944_v60 = vpop.f32.mrf.mxu1  ;;  %v2047_v56 = vpop.f32.mrf.mxu0 }
 0x25b   :  { %v2048_v12 = vadd.f32 %v2047_v56, %v1852_v35 }
 0x25e   :  { %v4168_v37 = vpop.f32.mrf.mxu0  ;;  %v4218_v36 = vpop.f32.mrf.mxu1 }
 0x25f   :  { %v2069_v38 = vadd.f32 %v4168_v37, %v1870_v58  ;;  %v5946_v34 = vadd.f32 %v4218_v36, %v2041_v1 }
 0x260   :  { %v2061_v51 = vpop.f32.mrf.mxu0  ;;  %v2227_v42 = vpop.f32.mrf.mxu1 }
 0x261   :  { %6526 = vst [vmem:[#allocation4_spill] sm:$0xff] %v5946_v34  ;;  %v2062_v21 = vadd.f32 %v2061_v51, %v1864_v23  ;;  %v5948_v6 = vadd.f32 %v2227_v42, %v2034_v57 }
 0x263   :  { %6527 = vst [vmem:[#allocation10_spill] sm:$0xff] %v5948_v6  ;;  %v1679_v6 = vadd.f32 %v5928_v27, %v5908_v4 }
 0x264   :  { %v5950_v19 = vpop.f32.mrf.mxu0  ;;  %v4221_v3 = vpop.f32.mrf.mxu1 }
 0x265   :  { %v5952_v13 = vadd.f32 %v4221_v3, %v2055_v25  ;;  %v2083_v4 = vadd.f32 %v5950_v19, %v5916_v43 }
 0x266   :  { %v5954_v55 = vpop.f32.mrf.mxu0  ;;  %v2243_v48 = vpop.f32.mrf.mxu1 }
 0x267   :  { %v5956_v33 = vadd.f32 %v2243_v48, %v2048_v12 }
 0x269   :  { %6528 = vst [vmem:[#allocation16_spill] sm:$0xff] %v5956_v33 }
 0x26a   :  { %v4174_v35 = vpop.f32.mrf.mxu0  ;;  %v4224_v59 = vpop.f32.mrf.mxu1 }
 0x26b   :  { %v5958_v47 = vadd.f32 %v4224_v59, %v2069_v38 }
 0x26c   :  { %v5960_v58 = vpop.f32.mrf.mxu0  ;;  %v2259_v45 = vpop.f32.mrf.mxu1 }
 0x26d   :  { %v5962_v9 = vadd.f32 %v2259_v45, %v2062_v21 }
 0x270   :  { %v4177_v23 = vpop.f32.mrf.mxu0  ;;  %v5964_v30 = vpop.f32.mrf.mxu1 }
 0x271   :  { %v2111_v45 = vadd.f32 %v4177_v23, %v5926_v24  ;;  %v1924_v24 = vadd.f32 %v5944_v60, %v1679_v6  ;;  %v2097_v23 = vadd.f32 %v4174_v35, %v5920_v17 }
 0x272   :  { %v2103_v63 = vpop.f32.mrf.mxu0  ;;  %v5966_v16 = vpop.f32.mrf.mxu1 }
 0x276   :  { %v4180_v52 = vpop.f32.mrf.mxu0  ;;  %v4230_v8 = vpop.f32.mrf.mxu1 }
 0x278   :  { %v2117_v7 = vpop.f32.mrf.mxu0  ;;  %v5968_v2 = vpop.f32.mrf.mxu1 }
 0x27c   :  { %v4183_v29 = vpop.f32.mrf.mxu0  ;;  %v4233_v26 = vpop.f32.mrf.mxu1 }
 0x27e   :  { %v2131_v14 = vpop.f32.mrf.mxu0  ;;  %v2307_v11 = vpop.f32.mrf.mxu1 }
 0x27f   :  { %v2132_v60 = vadd.f32 %v2131_v14, %v1924_v24  ;;  %v6544_v24 = vld [vmem:[#allocation10_spill] sm:$0xff] }
 0x282   :  { %v4236_v32 = vpop.f32.mrf.mxu1  ;;  %v5970_v41 = vpop.f32.mrf.mxu0 }
 0x283   :  { %6529 = vst [vmem:[#allocation12_spill] sm:$0xff] %v5970_v41  ;;  %v2316_v41 = vadd.f32 %v4233_v26, %v2111_v45 }
 0x284   :  { %v2323_v28 = vpop.f32.mrf.mxu1  ;;  %v5972_v50 = vpop.f32.mrf.mxu0 }
 0x285   :  { %6530 = vst [vmem:[#allocation13_spill] sm:$0xff] %v5972_v50  ;;  %v2125_v50 = vadd.f32 %v4180_v52, %v5934_v62  ;;  %v2300_v52 = vadd.f32 %v4230_v8, %v2097_v23 }
 0x286   :  { %v5974_v5 = vpop.f32.mrf.mxu0 }
 0x287   :  { %v4239_v22 = vpop.f32.mrf.mxu1  ;;  %v2332_v33 = vadd.f32 %v4236_v32, %v2125_v50 }
 0x288   :  { %v5976_v49 = vpop.f32.mrf.mxu0 }
 0x289   :  { %6531 = vst [vmem:[#allocation5_spill] sm:$0xff] %v5976_v49  ;;  %v2339_v20 = vpop.f32.mrf.mxu1  ;;  %v2118_v49 = vadd.f32 %v2117_v7, %v5936_v31 }
 0x28a   :  { %v5978_v46 = vpop.f32.mrf.mxu0 }
 0x28b   :  { %v5980_v1 = vpop.f32.mrf.mxu1 }
 0x28c   :  { %6532 = vst [vmem:[#allocation7_spill] sm:$0xff] %v5980_v1  ;;  %v5982_v18 = vpop.f32.mrf.mxu0  ;;  %v1689_v1 = vadd.f32 %v5924_v53, %v5906_v44  ;;  %v6545_v23 = vld [vmem:[#allocation13_spill] sm:$0xff] }
 0x28d   :  { %v5984_v40 = vpop.f32.mrf.mxu1 }
 0x28e   :  { %6533 = vst [vmem:[#allocation6_spill] sm:$0xff] %v5984_v40  ;;  %v5986_v57 = vpop.f32.mrf.mxu0 }
 0x28f   :  { %v5988_v39 = vpop.f32.mrf.mxu1 }
 0x290   :  { %6534 = vst [vmem:[#allocation8_spill] sm:$0xff] %v5988_v39  ;;  %v5990_v25 = vpop.f32.mrf.mxu0  ;;  %v1930_v39 = vadd.f32 %v5938_v0, %v1689_v1  ;;  %v2090_v0 = vadd.f32 %v5960_v58, %v5922_v61 }
 0x291   :  { %v5992_v56 = vpop.f32.mrf.mxu1 }
 0x292   :  { %6535 = vst [vmem:[#allocation9_spill] sm:$0xff] %v5992_v56  ;;  %v4286_v12 = vpop.f32.mrf.mxu0  ;;  %v2104_v56 = vadd.f32 %v2103_v63, %v5930_v15  ;;  %v2139_v27 = vadd.f32 %v4183_v29, %v1930_v39  ;;  %v2324_v15 = vadd.f32 %v2323_v28, %v2118_v49  ;;  %v2292_v32 = vadd.f32 %v5968_v2, %v2090_v0 }
 0x293   :  { %v5994_v37 = vpop.f32.mrf.mxu1  ;;  %v2521_v43 = vadd.f32 %v4286_v12, %v2300_v52 }
 0x294   :  { %v2514_v36 = vpop.f32.mrf.mxu0  ;;  %v2348_v6 = vadd.f32 %v4239_v22, %v2139_v27 }
 0x295   :  { %v5996_v38 = vpop.f32.mrf.mxu1  ;;  %v2515_v58 = vadd.f32 %v2514_v36, %v2292_v32  ;;  %v6538_v36 = vld [vmem:[#allocation16_spill] sm:$0xff]  ;;  %v6547_v52 = vld [vmem:[#allocation6_spill] sm:$0xff] }
 0x296   :  { %6536 = vst [vmem:[#allocation14_spill] sm:$0xff] %v5996_v38  ;;  %v4289_v51 = vpop.f32.mrf.mxu0  ;;  %v2308_v38 = vadd.f32 %v2307_v11, %v2104_v56  ;;  %v2076_v11 = vadd.f32 %v5954_v55, %v5918_v54 }
 0x297   :  { %v4339_v42 = vpop.f32.mrf.mxu1  ;;  %v2533_v44 = vadd.f32 %v4289_v51, %v2316_v41  ;;  %v2340_v41 = vadd.f32 %v2339_v20, %v2132_v60 }
 0x298   :  { %v2526_v21 = vpop.f32.mrf.mxu0  ;;  %v2276_v54 = vadd.f32 %v5966_v16, %v2076_v11  ;;  %v2491_v16 = vadd.f32 %v5982_v18, %v5962_v9  ;;  %v6541_v18 = vld [vmem:[#allocation4_spill] sm:$0xff] }
 0x299   :  { %v5998_v3 = vpop.f32.mrf.mxu1  ;;  %v2527_v31 = vadd.f32 %v2526_v21, %v2308_v38  ;;  %v6539_v38 = vld [vmem:[#allocation5_spill] sm:$0xff] }
 0x29a   :  { %v4292_v48 = vpop.f32.mrf.mxu0  ;;  %v2503_v20 = vadd.f32 %v5990_v25, %v2276_v54  ;;  %v2479_v51 = vadd.f32 %v6539_v38, %v6538_v36 }
 0x29b   :  { %v4342_v59 = vpop.f32.mrf.mxu1  ;;  %v2545_v63 = vadd.f32 %v4292_v48, %v2332_v33  ;;  %v6543_v48 = vld [vmem:[#allocation9_spill] sm:$0xff] }
 0x29c   :  { %v2538_v10 = vpop.f32.mrf.mxu0  ;;  %v2698_v8 = vadd.f32 %v4342_v59, %v2521_v43  ;;  %v2680_v39 = vadd.f32 %v5998_v3, %v2503_v20  ;;  %v2656_v59 = vadd.f32 %v6543_v48, %v2479_v51 }
 0x29d   :  { %v2691_v40 = vpop.f32.mrf.mxu1  ;;  %v2539_v17 = vadd.f32 %v2538_v10, %v2324_v15  ;;  %v6537_v56 = vld [vmem:[#allocation14_spill] sm:$0xff] }
 0x29e   :  { %v4295_v53 = vpop.f32.mrf.mxu0  ;;  %v2692_v2 = vadd.f32 %v2691_v40, %v2515_v58  ;;  %v2668_v25 = vadd.f32 %v6537_v56, %v2491_v16 }
 0x29f   :  { %v4345_v34 = vpop.f32.mrf.mxu1  ;;  %v2557_v28 = vadd.f32 %v4295_v53, %v2348_v6  ;;  %v6546_v53 = vld [vmem:[#allocation7_spill] sm:$0xff] }
 0x2a0   :  { %v2710_v7 = vadd.f32 %v4345_v34, %v2533_v44  ;;  %v2550_v19 = vpop.f32.mrf.mxu0  ;;  %v2284_v34 = vadd.f32 %v5964_v30, %v2083_v4  ;;  %v2497_v30 = vadd.f32 %v5978_v46, %v5958_v47  ;;  %v6540_v47 = vld [vmem:[#allocation8_spill] sm:$0xff]  ;;  %v2467_v44 = vadd.f32 %v6545_v23, %v6544_v24 }
 0x2a1   :  { %v2703_v62 = vpop.f32.mrf.mxu1  ;;  %v2551_v14 = vadd.f32 %v2550_v19, %v2340_v41 }
 0x2a2   :  { %v2704_v29 = vadd.f32 %v2703_v62, %v2527_v31  ;;  %v2509_v55 = vadd.f32 %v5986_v57, %v2284_v34  ;;  %v2674_v40 = vadd.f32 %v5994_v37, %v2497_v30  ;;  %v2485_v57 = vadd.f32 %v5974_v5, %v5952_v13  ;;  %v6542_v37 = vld [vmem:[#allocation12_spill] sm:$0xff] }
 0x2a3   :  { %v4348_v26 = vpop.f32.mrf.mxu1  ;;  %v2473_v3 = vadd.f32 %v6542_v37, %v6541_v18  ;;  %v2644_v31 = vadd.f32 %v6547_v52, %v2467_v44 }
 0x2a4   :  { %v2722_v35 = vadd.f32 %v4348_v26, %v2545_v63  ;;  %v2686_v1 = vadd.f32 %v4339_v42, %v2509_v55  ;;  %v2662_v46 = vadd.f32 %v6540_v47, %v2485_v57 }
 0x2a5   :  { %v2715_v33 = vpop.f32.mrf.mxu1  ;;  %v2650_v62 = vadd.f32 %v6546_v53, %v2473_v3 }
 0x2a6   :  { %4599 = vtanh.f32 %v2722_v35  ;;  %v2716_v61 = vadd.f32 %v2715_v33, %v2539_v17  ;;  %v6548_v35 = vmov 0.0  }
 0x2a7   :  { %4601 = vtanh.f32 %v2710_v7  ;;  %v4351_v10 = vpop.f32.mrf.mxu1 }
 0x2a8   :  { %4603 = vtanh.f32 %v2716_v61  ;;  %v2734_v50 = vadd.f32 %v4351_v10, %v2557_v28 }
 0x2a9   :  { %4605 = vtanh.f32 %v2704_v29  ;;  %v2727_v22 = vpop.f32.mrf.mxu1 }
 0x2aa   :  { %4607 = vtanh.f32 %v2734_v50  ;;  %v2728_v49 = vadd.f32 %v2727_v22, %v2551_v14 }
 0x2ab   :  { %4609 = vtanh.f32 %v2698_v8 }
 0x2ac   :  { %4611 = vtanh.f32 %v2728_v49 }
 0x2ad   :  { %4613 = vtanh.f32 %v2692_v2 }
 0x2ae   :  { %4615 = vtanh.f32 %v2686_v1 }
 0x2af   :  { %4617 = vtanh.f32 %v2680_v39 }
 0x2b0   :  { %4619 = vtanh.f32 %v2674_v40  ;;  %v2753_v40 = vld [vmem:[%s6410_s5] sm:$0x1] }
 0x2b1   :  { %4621 = vtanh.f32 %v2668_v25  ;;  %v6131_v47 = vand.u32 4294901760, %v2753_v40 }
 0x2b2   :  { %4623 = vtanh.f32 %v2662_v46 }
 0x2b3   :  { %v4600_v12 = vpop.eup %4599  ;;  %4625 = vtanh.f32 %v2656_v59  ;;  %v6158_v44 = vsub.f32 %v2753_v40, %v6131_v47 }
 0x2b4   :  { %v4602_v42 = vpop.eup %4601  ;;  %v6034_v21 = vand.u32 4294901760, %v4600_v12  ;;  %4627 = vtanh.f32 %v2650_v62 }
 0x2b5   :  { %v4604_v9 = vpop.eup %4603  ;;  %v6046_v15 = vand.u32 4294901760, %v4602_v42  ;;  %4629 = vtanh.f32 %v2644_v31 }
 0x2b6   :  { %v4606_v13 = vpop.eup %4605  ;;  %v6039_v5 = vand.u32 4294901760, %v4604_v9  ;;  %v6049_v63 = vsub.f32 %v4600_v12, %v6034_v21 }
 0x2b7   :  { %v4608_v45 = vpop.eup %4607  ;;  %v6058_v6 = vand.u32 4294901760, %v4606_v13  ;;  %v6073_v33 = vsub.f32 %v4602_v42, %v6046_v15 }
 0x2b8   :  { %v4610_v4 = vpop.eup %4609  ;;  %v6044_v27 = vand.u32 4294901760, %v4608_v45  ;;  %v6061_v17 = vsub.f32 %v4604_v9, %v6039_v5  ;;  %v2872_v29 = vand.u32 4294901760, %v6049_v63 }
 0x2b9   :  { %v4612_v0 = vpop.eup %4611  ;;  %v6064_v11 = vand.u32 4294901760, %v4610_v4  ;;  %v6085_v8 = vsub.f32 %v4606_v13, %v6058_v6  ;;  %v2886_v22 = vand.u32 4294901760, %v6073_v33 }
 0x2ba   :  { %v4614_v7 = vpop.eup %4613  ;;  %4353 = vmatpush3.msra.mxu0 %v6044_v27  ;;  %v6053_v26 = vand.u32 4294901760, %v4612_v0  ;;  %v6056_v60 = vsub.f32 %v4608_v45, %v6044_v27  ;;  %v2879_v58 = vand.u32 4294901760, %v6061_v17  ;;  %v2873_v2 = vsub.f32 %v6049_v63, %v2872_v29 }
 0x2bb   :  { %4354 = vmatprep.subr.mxu0 %v6548_v35  ;;  %v4616_v32 = vpop.eup %4615  ;;  %v6076_v41 = vand.u32 4294901760, %v4614_v7  ;;  %v6091_v14 = vsub.f32 %v4610_v4, %v6064_v11  ;;  %v2893_v39 = vand.u32 4294901760, %v6085_v8  ;;  %v2887_v12 = vsub.f32 %v6073_v33, %v2886_v22 }
 0x2bc   :  { %4355 = vmatpush3.msra.mxu0 %v6053_v26  ;;  %v2858_v43 = vand.u32 4294901760, %v6056_v60  ;;  %v6069_v19 = vsub.f32 %v4612_v0, %v6053_v26  ;;  %v4618_v28 = vpop.eup %4617  ;;  %v6088_v10 = vand.u32 4294901760, %v4616_v32  ;;  %v2880_v30 = vsub.f32 %v6061_v17, %v2879_v58 }
 0x2bd   :  { %4356 = vmatprep.subr.mxu0 %v6548_v35  ;;  %v4620_v50 = vpop.eup %4619  ;;  %v6102_v49 = vand.u32 4294901760, %v4618_v28  ;;  %v6110_v16 = vsub.f32 %v4614_v7, %v6076_v41  ;;  %v2874_v25 = vand.u32 4294901760, %v2873_v2  ;;  %v2900_v36 = vand.u32 4294901760, %v6091_v14 }
 0x2be   :  { %4357 = vmatpush3.msra.mxu0 %v6034_v21  ;;  %v2859_v61 = vsub.f32 %v6056_v60, %v2858_v43  ;;  %v2865_v34 = vand.u32 4294901760, %v6069_v19  ;;  %v4622_v20 = vpop.eup %4621  ;;  %v6117_v57 = vand.u32 4294901760, %v4620_v50  ;;  %v6125_v38 = vsub.f32 %v4616_v32, %v6088_v10 }
 0x2bf   :  { %4358 = vmatprep.subr.mxu0 %v6548_v35  ;;  %v4624_v56 = vpop.eup %4623  ;;  %v6129_v51 = vand.u32 4294901760, %v4622_v20  ;;  %v2881_v42 = vand.u32 4294901760, %v2880_v30  ;;  %v2894_v9 = vsub.f32 %v6085_v8, %v2893_v39  ;;  %v2907_v18 = vand.u32 4294901760, %v6110_v16 }
 0x2c0   :  { %4359 = vmatpush3.msra.mxu0 %v6039_v5  ;;  %v2860_v54 = vand.u32 4294901760, %v2859_v61  ;;  %v2866_v55 = vsub.f32 %v6069_v19, %v2865_v34  ;;  %v4626_v46 = vpop.eup %4625  ;;  %v6139_v37 = vsub.f32 %v4618_v28, %v6102_v49  ;;  %v6143_v3 = vand.u32 4294901760, %v4624_v56 }
 0x2c1   :  { %4360 = vmatprep.subr.mxu0 %v6548_v35  ;;  %v4628_v48 = vpop.eup %4627  ;;  %v2888_v59 = vand.u32 4294901760, %v2887_v12  ;;  %v2901_v13 = vsub.f32 %v6091_v14, %v2900_v36  ;;  %v2914_v45 = vand.u32 4294901760, %v6125_v38  ;;  %v6151_v24 = vsub.f32 %v4620_v50, %v6117_v57 }
 0x2c2   :  { %4361 = vmatpush3.msra.mxu0 %v6046_v15  ;;  %4388 = vmatpush3.msra.mxu1 %v2860_v54  ;;  %v2867_v1 = vand.u32 4294901760, %v2866_v55  ;;  %v6155_v23 = vand.u32 4294901760, %v4626_v46  ;;  %v4630_v53 = vpop.eup %4629  ;;  %v2895_v62 = vand.u32 4294901760, %v2894_v9  ;;  %v2908_v4 = vsub.f32 %v6110_v16, %v2907_v18 }
 0x2c3   :  { %4362 = vmatprep.subr.mxu0 %v6548_v35  ;;  %4389 = vmatprep.subr.mxu1 %v6548_v35  ;;  %v2921_v0 = vand.u32 4294901760, %v6139_v37  ;;  %v6166_v52 = vsub.f32 %v4622_v20, %v6129_v51  ;;  %v6170_v31 = vand.u32 4294901760, %v4628_v48  ;;  %v2902_v7 = vand.u32 4294901760, %v2901_v13 }
 0x2c4   :  { %4363 = vmatpush3.msra.mxu0 %v6058_v6  ;;  %4390 = vmatpush3.msra.mxu1 %v2867_v1  ;;  %v2915_v32 = vsub.f32 %v6125_v38, %v2914_v45  ;;  %v2928_v28 = vand.u32 4294901760, %v6151_v24  ;;  %v6178_v61 = vsub.f32 %v4624_v56, %v6143_v3  ;;  %v6182_v50 = vand.u32 4294901760, %v4630_v53 }
 0x2c5   :  { %4364 = vmatprep.subr.mxu0 %v6548_v35  ;;  %4391 = vmatprep.subr.mxu1 %v6548_v35  ;;  %v2847_v54 = vand.u32 4294901760, %v6158_v44  ;;  %v2909_v55 = vand.u32 4294901760, %v2908_v4  ;;  %v2922_v2 = vsub.f32 %v6139_v37, %v2921_v0  ;;  %v2935_v20 = vand.u32 4294901760, %v6166_v52 }
 0x2c6   :  { %4365 = vmatpush3.msra.mxu0 %v6064_v11  ;;  %4392 = vmatpush3.msra.mxu1 %v2874_v25  ;;  %v6191_v1 = vsub.f32 %v4626_v46, %v6155_v23  ;;  %v2916_v30 = vand.u32 4294901760, %v2915_v32  ;;  %v2929_v40 = vsub.f32 %v6151_v24, %v2928_v28  ;;  %v2942_v56 = vand.u32 4294901760, %v6178_v61 }
 0x2c7   :  { %4366 = vmatprep.subr.mxu0 %v6548_v35  ;;  %4393 = vmatprep.subr.mxu1 %v6548_v35  ;;  %v6201_v25 = vsub.f32 %v4628_v48, %v6170_v31  ;;  %v2848_v12 = vsub.f32 %v6158_v44, %v2847_v54  ;;  %v2923_v46 = vand.u32 4294901760, %v2922_v2  ;;  %v6214_v48 = vsub.f32 %v4630_v53, %v6182_v50 }
 0x2c8   :  { %4367 = vmatpush3.msra.mxu0 %v6076_v41  ;;  %4394 = vmatpush3.msra.mxu1 %v2881_v42  ;;  %v2936_v42 = vsub.f32 %v6166_v52, %v2935_v20  ;;  %v2949_v9 = vand.u32 4294901760, %v6191_v1  ;;  %v2943_v13 = vsub.f32 %v6178_v61, %v2942_v56 }
 0x2c9   :  { %4368 = vmatprep.subr.mxu0 %v6548_v35  ;;  %4395 = vmatprep.subr.mxu1 %v6548_v35  ;;  %v2849_v53 = vand.u32 4294901760, %v2848_v12  ;;  %v2963_v32 = vand.u32 4294901760, %v6214_v48 }
 0x2ca   :  { %4369 = vmatpush3.msra.mxu0 %v6088_v10  ;;  %4396 = vmatpush3.msra.mxu1 %v2888_v59  ;;  %v2930_v59 = vand.u32 4294901760, %v2929_v40  ;;  %v2937_v4 = vand.u32 4294901760, %v2936_v42 }
 0x2cb   :  { %4370 = vmatprep.subr.mxu0 %v6548_v35  ;;  %4397 = vmatprep.subr.mxu1 %v6548_v35  ;;  %v2964_v40 = vsub.f32 %v6214_v48, %v2963_v32 }
 0x2cc   :  { %4371 = vmatpush3.msra.mxu0 %v6102_v49  ;;  %4398 = vmatpush3.msra.mxu1 %v2895_v62  ;;  %v2956_v62 = vand.u32 4294901760, %v6201_v25 }
 0x2cd   :  { %4372 = vmatprep.subr.mxu0 %v6548_v35  ;;  %4399 = vmatprep.subr.mxu1 %v6548_v35 }
 0x2ce   :  { %4373 = vmatpush3.msra.mxu0 %v6117_v57  ;;  %4400 = vmatpush3.msra.mxu1 %v2902_v7  ;;  %v2950_v7 = vsub.f32 %v6191_v1, %v2949_v9  ;;  %v2957_v2 = vsub.f32 %v6201_v25, %v2956_v62 }
 0x2cf   :  { %4374 = vmatprep.subr.mxu0 %v6548_v35  ;;  %4401 = vmatprep.subr.mxu1 %v6548_v35 }
 0x2d0   :  { %4375 = vmatpush3.msra.mxu0 %v6129_v51  ;;  %4402 = vmatpush3.msra.mxu1 %v2909_v55  ;;  %v2944_v55 = vand.u32 4294901760, %v2943_v13  ;;  %v2958_v12 = vand.u32 4294901760, %v2957_v2 }
 0x2d1   :  { %4376 = vmatprep.subr.mxu0 %v6548_v35  ;;  %4403 = vmatprep.subr.mxu1 %v6548_v35 }
 0x2d2   :  { %4377 = vmatpush3.msra.mxu0 %v6143_v3  ;;  %4404 = vmatpush3.msra.mxu1 %v2916_v30  ;;  %v2951_v30 = vand.u32 4294901760, %v2950_v7 }
 0x2d3   :  { %4378 = vmatprep.subr.mxu0 %v6548_v35  ;;  %4405 = vmatprep.subr.mxu1 %v6548_v35 }
 0x2d4   :  { %4379 = vmatpush3.msra.mxu0 %v6155_v23  ;;  %4406 = vmatpush3.msra.mxu1 %v2923_v46  ;;  %v2965_v46 = vand.u32 4294901760, %v2964_v40 }
 0x2d5   :  { %4380 = vmatprep.subr.mxu0 %v6548_v35  ;;  %4407 = vmatprep.subr.mxu1 %v6548_v35 }
 0x2d6   :  { %4381 = vmatpush3.msra.mxu0 %v6170_v31  ;;  %4408 = vmatpush3.msra.mxu1 %v2930_v59 }
 0x2d7   :  { %4382 = vmatprep.subr.mxu0 %v6548_v35  ;;  %4409 = vmatprep.subr.mxu1 %v6548_v35 }
 0x2d8   :  { %4383 = vmatpush3.msra.mxu0 %v6182_v50  ;;  %4410 = vmatpush3.msra.mxu1 %v2937_v4 }
 0x2d9   :  { %4385 = vmatmul.mubr.f32.vlgmr.msra.gmra.mxu0 %v2849_v53  ;;  %4411 = vmatprep.subr.mxu1 %v6548_v35 }
 0x2da   :  { %4422 = vmatprep.subr.mxu0 %v6548_v35  ;;  %4412 = vmatpush3.msra.mxu1 %v2944_v55 }
 0x2db   :  { %4423 = vmatpush3.msra.mxu0 %v6056_v60  ;;  %4413 = vmatprep.subr.mxu1 %v6548_v35 }
 0x2dc   :  { %4424 = vmatprep.subr.mxu0 %v6548_v35  ;;  %4414 = vmatpush3.msra.mxu1 %v2951_v30 }
 0x2dd   :  { %4425 = vmatpush3.msra.mxu0 %v6069_v19  ;;  %4415 = vmatprep.subr.mxu1 %v6548_v35  ;;  %v2758_v19 = vpop.permute.xlu0 %2757 }
 0x2de   :  { %4426 = vmatprep.subr.mxu0 %v6548_v35  ;;  %4416 = vmatpush3.msra.mxu1 %v2958_v12 }
 0x2df   :  { %4427 = vmatpush3.msra.mxu0 %v6049_v63  ;;  %4417 = vmatprep.subr.mxu1 %v6548_v35 }
 0x2e0   :  { %4428 = vmatprep.subr.mxu0 %v6548_v35  ;;  %4418 = vmatpush3.msra.mxu1 %v2965_v46 }
 0x2e1   :  { %4429 = vmatpush3.msra.mxu0 %v6061_v17  ;;  %4420 = vmatmul.mubr.f32.vlgmr.msra.gmra.mxu1 %v6131_v47  ;;  %v2760_v17 = vlaneseq }
 0x2e2   :  { %4430 = vmatprep.subr.mxu0 %v6548_v35  ;;  %4457 = vmatprep.subr.mxu1 %v6548_v35 }
 0x2e3   :  { %4431 = vmatpush3.msra.mxu0 %v6073_v33  ;;  %4458 = vmatpush3.msra.mxu1 %v6044_v27 }
 0x2e4   :  { %4432 = vmatprep.subr.mxu0 %v6548_v35  ;;  %4459 = vmatprep.subr.mxu1 %v6548_v35 }
 0x2e5   :  { %4433 = vmatpush3.msra.mxu0 %v6085_v8  ;;  %4460 = vmatpush3.msra.mxu1 %v6053_v26 }
 0x2e6   :  { %4434 = vmatprep.subr.mxu0 %v6548_v35  ;;  %4461 = vmatprep.subr.mxu1 %v6548_v35 }
 0x2e7   :  { %4435 = vmatpush3.msra.mxu0 %v6091_v14  ;;  %4462 = vmatpush3.msra.mxu1 %v6034_v21 }
 0x2e8   :  { %4436 = vmatprep.subr.mxu0 %v6548_v35  ;;  %4463 = vmatprep.subr.mxu1 %v6548_v35 }
 0x2e9   :  { %4437 = vmatpush3.msra.mxu0 %v6110_v16  ;;  %4464 = vmatpush3.msra.mxu1 %v6039_v5 }
 0x2ea   :  { %4438 = vmatprep.subr.mxu0 %v6548_v35  ;;  %4465 = vmatprep.subr.mxu1 %v6548_v35 }
 0x2eb   :  { %4439 = vmatpush3.msra.mxu0 %v6125_v38  ;;  %4466 = vmatpush3.msra.mxu1 %v6046_v15 }
 0x2ec   :  { %4440 = vmatprep.subr.mxu0 %v6548_v35  ;;  %4467 = vmatprep.subr.mxu1 %v6548_v35 }
 0x2ed   :  { %4441 = vmatpush3.msra.mxu0 %v6139_v37  ;;  %4468 = vmatpush3.msra.mxu1 %v6058_v6 }
 0x2ee   :  { %4442 = vmatprep.subr.mxu0 %v6548_v35  ;;  %4469 = vmatprep.subr.mxu1 %v6548_v35 }
 0x2ef   :  { %4443 = vmatpush3.msra.mxu0 %v6151_v24  ;;  %4470 = vmatpush3.msra.mxu1 %v6064_v11 }
 0x2f0   :  { %4444 = vmatprep.subr.mxu0 %v6548_v35  ;;  %4471 = vmatprep.subr.mxu1 %v6548_v35 }
 0x2f1   :  { %4445 = vmatpush3.msra.mxu0 %v6166_v52  ;;  %4472 = vmatpush3.msra.mxu1 %v6076_v41 }
 0x2f2   :  { %4446 = vmatprep.subr.mxu0 %v6548_v35  ;;  %4473 = vmatprep.subr.mxu1 %v6548_v35 }
 0x2f3   :  { %4447 = vmatpush3.msra.mxu0 %v6178_v61  ;;  %4474 = vmatpush3.msra.mxu1 %v6088_v10 }
 0x2f4   :  { %4448 = vmatprep.subr.mxu0 %v6548_v35  ;;  %4475 = vmatprep.subr.mxu1 %v6548_v35 }
 0x2f5   :  { %4449 = vmatpush3.msra.mxu0 %v6191_v1  ;;  %4476 = vmatpush3.msra.mxu1 %v6102_v49 }
 0x2f6   :  { %4450 = vmatprep.subr.mxu0 %v6548_v35  ;;  %4477 = vmatprep.subr.mxu1 %v6548_v35 }
 0x2f7   :  { %4451 = vmatpush3.msra.mxu0 %v6201_v25  ;;  %4478 = vmatpush3.msra.mxu1 %v6117_v57 }
 0x2f8   :  { %4452 = vmatprep.subr.mxu0 %v6548_v35  ;;  %4479 = vmatprep.subr.mxu1 %v6548_v35 }
 0x2f9   :  { %4453 = vmatpush3.msra.mxu0 %v6214_v48  ;;  %4454 = vmatprep.mubr.msk.f32.mxu0 %vm4633_vm1, %v6548_v35 }
 0x2fa   :  { %4480 = vmatpush3.msra.mxu1 %v6129_v51  ;;  %4455 = vmatmul.mubr.f32.vlgmr.msra.gmra.mxu0 %v6158_v44 }
 0x2fb   :  { %4481 = vmatprep.subr.mxu1 %v6548_v35  ;;  %4492 = vmatprep.subr.mxu0 %v6548_v35 }
 0x2fc   :  { %4482 = vmatpush3.msra.mxu1 %v6143_v3  ;;  %4493 = vmatpush3.msra.mxu0 %v2858_v43 }
 0x2fd   :  { %4483 = vmatprep.subr.mxu1 %v6548_v35  ;;  %4494 = vmatprep.subr.mxu0 %v6548_v35 }
 0x2fe   :  { %4484 = vmatpush3.msra.mxu1 %v6155_v23  ;;  %4495 = vmatpush3.msra.mxu0 %v2865_v34 }
 0x2ff   :  { %4485 = vmatprep.subr.mxu1 %v6548_v35  ;;  %4496 = vmatprep.subr.mxu0 %v6548_v35 }
 0x300   :  { %4486 = vmatpush3.msra.mxu1 %v6170_v31  ;;  %4497 = vmatpush3.msra.mxu0 %v2872_v29 }
 0x301   :  { %4487 = vmatprep.subr.mxu1 %v6548_v35  ;;  %4498 = vmatprep.subr.mxu0 %v6548_v35 }
 0x302   :  { %4488 = vmatpush3.msra.mxu1 %v6182_v50  ;;  %4489 = vmatprep.mubr.msk.f32.mxu1 %vm4633_vm1, %v6548_v35 }
 0x303   :  { %4499 = vmatpush3.msra.mxu0 %v2879_v58  ;;  %4490 = vmatmul.mubr.f32.vlgmr.msra.gmra.mxu1 %v2847_v54 }
 0x304   :  { %4500 = vmatprep.subr.mxu0 %v6548_v35  ;;  %4527 = vmatprep.subr.mxu1 %v6548_v35 }
 0x305   :  { %4501 = vmatpush3.msra.mxu0 %v2886_v22  ;;  %4528 = vmatpush3.msra.mxu1 %v6044_v27 }
 0x306   :  { %4502 = vmatprep.subr.mxu0 %v6548_v35  ;;  %4529 = vmatprep.subr.mxu1 %v6548_v35 }
 0x307   :  { %4503 = vmatpush3.msra.mxu0 %v2893_v39  ;;  %4530 = vmatpush3.msra.mxu1 %v6053_v26 }
 0x308   :  { %4504 = vmatprep.subr.mxu0 %v6548_v35  ;;  %4531 = vmatprep.subr.mxu1 %v6548_v35 }
 0x309   :  { %4505 = vmatpush3.msra.mxu0 %v2900_v36  ;;  %4532 = vmatpush3.msra.mxu1 %v6034_v21 }
 0x30a   :  { %4506 = vmatprep.subr.mxu0 %v6548_v35  ;;  %4533 = vmatprep.subr.mxu1 %v6548_v35 }
 0x30b   :  { %4507 = vmatpush3.msra.mxu0 %v2907_v18  ;;  %4534 = vmatpush3.msra.mxu1 %v6039_v5 }
 0x30c   :  { %4508 = vmatprep.subr.mxu0 %v6548_v35  ;;  %4535 = vmatprep.subr.mxu1 %v6548_v35 }
 0x30d   :  { %4509 = vmatpush3.msra.mxu0 %v2914_v45  ;;  %4536 = vmatpush3.msra.mxu1 %v6046_v15 }
 0x30e   :  { %4510 = vmatprep.subr.mxu0 %v6548_v35  ;;  %4537 = vmatprep.subr.mxu1 %v6548_v35 }
 0x30f   :  { %4511 = vmatpush3.msra.mxu0 %v2921_v0  ;;  %4538 = vmatpush3.msra.mxu1 %v6058_v6 }
 0x310   :  { %4512 = vmatprep.subr.mxu0 %v6548_v35  ;;  %4539 = vmatprep.subr.mxu1 %v6548_v35 }
 0x311   :  { %4513 = vmatpush3.msra.mxu0 %v2928_v28  ;;  %4540 = vmatpush3.msra.mxu1 %v6064_v11  ;;  %v2761_v11 = vshrl.u32 %v2760_v17, 7 }
 0x312   :  { %4514 = vmatprep.subr.mxu0 %v6548_v35  ;;  %4541 = vmatprep.subr.mxu1 %v6548_v35 }
 0x313   :  { %4515 = vmatpush3.msra.mxu0 %v2935_v20  ;;  %4542 = vmatpush3.msra.mxu1 %v6076_v41  ;;  %v2762_v43 = vsub.s32 0, %v2761_v11 }
 0x314   :  { %4516 = vmatprep.subr.mxu0 %v6548_v35  ;;  %4543 = vmatprep.subr.mxu1 %v6548_v35 }
 0x315   :  { %4517 = vmatpush3.msra.mxu0 %v2942_v56  ;;  %4544 = vmatpush3.msra.mxu1 %v6088_v10  ;;  %v2763_v29 = vrot.slane %v2758_v19, %v2762_v43 }
 0x316   :  { %4518 = vmatprep.subr.mxu0 %v6548_v35  ;;  %4545 = vmatprep.subr.mxu1 %v6548_v35 }
 0x317   :  { %4519 = vmatpush3.msra.mxu0 %v2949_v9  ;;  %4546 = vmatpush3.msra.mxu1 %v6102_v49 }
 0x318   :  { %4520 = vmatprep.subr.mxu0 %v6548_v35  ;;  %4547 = vmatprep.subr.mxu1 %v6548_v35 }
 0x319   :  { %4521 = vmatpush3.msra.mxu0 %v2956_v62  ;;  %4548 = vmatpush3.msra.mxu1 %v6117_v57 }
 0x31a   :  { %4522 = vmatprep.subr.mxu0 %v6548_v35  ;;  %4549 = vmatprep.subr.mxu1 %v6548_v35 }
 0x31b   :  { %4523 = vmatpush3.msra.mxu0 %v2963_v32  ;;  %4524 = vmatprep.mubr.msk.f32.mxu0 %vm4633_vm1, %v6548_v35 }
 0x31c   :  { %4550 = vmatpush3.msra.mxu1 %v6129_v51  ;;  %4525 = vmatmul.mubr.f32.vlgmr.msra.gmra.mxu0 %v6131_v47 }
 0x31d   :  { %4551 = vmatprep.subr.mxu1 %v6548_v35  ;;  %4559 = vmatprep.mubr.msk.f32.mxu1 %vm4633_vm1, %v6548_v35 }
 0x31e   :  { %4552 = vmatpush3.msra.mxu1 %v6143_v3 }
 0x31f   :  { %4553 = vmatprep.subr.mxu1 %v6548_v35 }
 0x320   :  { %4554 = vmatpush3.msra.mxu1 %v6155_v23 }
 0x321   :  { %4555 = vmatprep.subr.mxu1 %v6548_v35 }
 0x322   :  { %4556 = vmatpush3.msra.mxu1 %v6170_v31 }
 0x323   :  { %4557 = vmatprep.subr.mxu1 %v6548_v35 }
 0x324   :  { %4558 = vmatpush3.msra.mxu1 %v6182_v50 }
 0x325   :  { %4560 = vmatmul.mubr.f32.vlgmr.msra.gmra.mxu1 %v6131_v47 }
 0x399   :  { %v2851_v21 = vpop.f32.mrf.mxu0 }
 0x39a   :  { %v2852_v33 = vadd.f32 %v2851_v21, %v2763_v29 }
 0x39b   :  { %v4386_v5 = vpop.f32.mrf.mxu0 }
 0x3a1   :  { %v3002_v27 = vpop.f32.mrf.mxu1 }
 0x3a2   :  { %v3003_v35 = vadd.f32 %v3002_v27, %v2852_v33 }
 0x3a3   :  { %v4421_v15 = vpop.f32.mrf.mxu1 }
 0x3ba   :  { %v3106_v63 = vpop.f32.mrf.mxu0 }
 0x3bb   :  { %v3107_v58 = vadd.f32 %v3106_v63, %v3003_v35 }
 0x3bc   :  { %v4456_v26 = vpop.f32.mrf.mxu0 }
 0x3c3   :  { %v3195_v60 = vpop.f32.mrf.mxu1 }
 0x3c4   :  { %v3196_v8 = vadd.f32 %v3195_v60, %v3107_v58 }
 0x3c5   :  { %v4491_v6 = vpop.f32.mrf.mxu1 }
 0x3dc   :  { %v3314_v41 = vpop.f32.mrf.mxu0 }
 0x3dd   :  { %v3315_v10 = vadd.f32 %v3314_v41, %v3196_v8 }
 0x3de   :  { %v4526_v34 = vpop.f32.mrf.mxu0 }
 0x3e5   :  { %v3401_v14 = vpop.f32.mrf.mxu1 }
 0x3e6   :  { %v3402_v22 = vadd.f32 %v3401_v14, %v3315_v10 }
 0x3e7   :  { %v4561_v49 = vpop.f32.mrf.mxu1 }
 0x3e8   :  { %3405 = vst [vmem:[%s6411_s7] sm:$0x1] %v3402_v22 }

</bundles_post_ra>
